<compile_context>
chip_gen: v5e
topology: v5e:2x2
jax: 0.10.0
libtpu: 0.0.40
codegen_flags: <defaults>
</compile_context>

<pallas_src>
import functools

import jax
import jax.numpy as jnp
from jax import lax
from jax.experimental import pallas as pl
from jax.experimental.pallas import tpu as pltpu


# ---------------------------------------------------------------------------
# Helpers
# ---------------------------------------------------------------------------
def _sublane_quantum(dtype) -> int:
    # bf16 packs 16 sublanes per vreg; f32 packs 8.
    return 16 if jnp.dtype(dtype).itemsize == 2 else 8


def _pick_tile(dim: int, preferred: int, quantum: int) -> int:
    """Largest divisor of `dim` that is <= preferred, preferring multiples of
    256/128 (MXU M/N fill, unmasked stores), falling back to `quantum`
    multiples, then the full dim (always legal per BlockSpec rules)."""
    if dim <= preferred:
        return dim
    for step in (256, 128, quantum):
        if step < quantum:
            continue
        t = (preferred // step) * step
        while t >= step:
            if dim % t == 0:
                return t
            t -= step
    return dim


def _vmem_limit_bytes() -> int:
    """Generation-aware scoped-VMEM limit with headroom; safe fallback."""
    try:
        cap = pltpu.get_tpu_info().vmem_capacity_bytes
        return max(min(cap - (16 << 20), 96 << 20), 32 << 20)
    except Exception:
        return 48 << 20  # < 64 MiB physical on v7x, > 16/32 MiB scoped defaults


# ---------------------------------------------------------------------------
# Kernel 1: fused QKV projection  (x @ W_qkv + b_qkv), tiled with accumulator.
# ---------------------------------------------------------------------------
def _qkv_kernel(x_ref, w_ref, b_ref, o_ref, acc_ref):
    k = pl.program_id(2)

    @pl.when(k == 0)
    def _():
        acc_ref[...] = jnp.zeros_like(acc_ref)

    acc_ref[...] += jnp.dot(
        x_ref[...], w_ref[...], preferred_element_type=jnp.float32
    )

    @pl.when(k == pl.num_programs(2) - 1)
    def _():
        o_ref[...] = (acc_ref[...] + b_ref[...].astype(jnp.float32)).astype(o_ref.dtype)


def qkv_proj(x, w, b, *, tm_pref=256, tn_pref=768, tk_pref=512):
    S, H = x.shape
    O = w.shape[1]
    qm = _sublane_quantum(x.dtype)
    tm = _pick_tile(S, tm_pref, qm)
    tn = _pick_tile(O, tn_pref, 128)
    tk = _pick_tile(H, tk_pref, 128)
    grid = (S // tm, O // tn, H // tk)
    itemsize = jnp.dtype(x.dtype).itemsize
    return pl.pallas_call(
        _qkv_kernel,
        out_shape=jax.ShapeDtypeStruct((S, O), x.dtype),
        grid_spec=pltpu.PrefetchScalarGridSpec(
            num_scalar_prefetch=0,
            grid=grid,
            in_specs=[
                pl.BlockSpec((tm, tk), lambda i, j, k: (i, k)),
                pl.BlockSpec((tk, tn), lambda i, j, k: (k, j)),
                pl.BlockSpec((1, tn), lambda i, j, k: (0, j)),
            ],
            out_specs=pl.BlockSpec((tm, tn), lambda i, j, k: (i, j)),
            scratch_shapes=[pltpu.VMEM((tm, tn), jnp.float32)],
        ),
        compiler_params=pltpu.CompilerParams(
            dimension_semantics=("parallel", "parallel", "arbitrary"),
            vmem_limit_bytes=_vmem_limit_bytes(),
        ),
        cost_estimate=pl.CostEstimate(
            flops=2 * S * H * O,
            transcendentals=0,
            bytes_accessed=(S * H * (O // tn) + H * O + O + S * O) * itemsize,
        ),
    )(x, w, b)


# ---------------------------------------------------------------------------
# Kernel 2: multi-head attention, reading q/k/v straight out of the (S, 3H)
# QKV buffer (column-block slices) and writing straight into (S, H).
# KV-tiled online softmax; G heads per grid step for lane-dense blocks.
# Softmax scale is pre-folded into the q weights, not applied here.
# ---------------------------------------------------------------------------
def _attn_kernel(q_ref, k_ref, v_ref, o_ref, m_ref, l_ref, acc_ref, *,
                 heads_per_block, head_dim):
    ki = pl.program_id(2)

    @pl.when(ki == 0)
    def _():
        m_ref[...] = jnp.full_like(m_ref, -jnp.inf)
        l_ref[...] = jnp.zeros_like(l_ref)
        acc_ref[...] = jnp.zeros_like(acc_ref)

    # Static Python loop over the heads packed in this column block.
    for g in range(heads_per_block):
        cols = slice(g * head_dim, (g + 1) * head_dim)
        qg = q_ref[:, cols]                              # (tq, D)  scale pre-folded
        kg = k_ref[:, cols]                              # (tk, D)
        vg = v_ref[:, cols]                              # (tk, D)

        # QK^T with no explicit transpose: contract the last dims on the MXU.
        s = lax.dot_general(
            qg, kg, (((1,), (1,)), ((), ())),
            preferred_element_type=jnp.float32,
        )                                                # (tq, tk) f32

        m_prev = m_ref[g]                                # (tq, 1)
        l_prev = l_ref[g]                                # (tq, 1)
        m_new = jnp.maximum(m_prev, jnp.max(s, axis=-1, keepdims=True))
        alpha = jnp.exp(m_prev - m_new)
        p = jnp.exp(s - m_new)                           # (tq, tk) f32
        l_ref[g] = alpha * l_prev + jnp.sum(p, axis=-1, keepdims=True)

        # PV in the activation dtype (bf16), f32 accumulation.
        pv = jnp.dot(p.astype(vg.dtype), vg, preferred_element_type=jnp.float32)
        acc_ref[g] = alpha * acc_ref[g] + pv
        m_ref[g] = m_new

    @pl.when(ki == pl.num_programs(2) - 1)
    def _():
        # Exact division in the finalize (runs once per output tile).
        outs = [acc_ref[g] / l_ref[g] for g in range(heads_per_block)]
        out = outs[0] if len(outs) == 1 else jnp.concatenate(outs, axis=-1)
        o_ref[...] = out.astype(o_ref.dtype)             # single lane-dense store


def _pick_head_group(num_heads: int, head_dim: int) -> int:
    """Pick G heads per column block so G*head_dim is a multiple of 128 lanes,
    preferring the widest block up to 256 lanes (wide unmasked stores)."""
    candidates = [g for g in range(1, num_heads + 1)
                  if num_heads % g == 0 and (g * head_dim) % 128 == 0]
    if not candidates:
        # TODO(synk): non-128-alignable head widths need padded head_dim or
        # masked stores; unsupported here rather than silently mis-lowering.
        raise ValueError("num_heads*head_dim must allow a 128-lane-aligned head group")
    best = None
    for g in candidates:
        if g * head_dim <= 256:
            best = g
    return best if best is not None else candidates[0]


def mha_from_qkv(qkv, *, num_heads, head_dim,
                 q_block_pref=512, kv_block_pref=2048):
    S = qkv.shape[0]
    H = num_heads * head_dim
    assert qkv.shape[1] == 3 * H

    G = _pick_head_group(num_heads, head_dim)
    gw = G * head_dim
    num_groups = num_heads // G

    qm = _sublane_quantum(qkv.dtype)
    tq = _pick_tile(S, q_block_pref, qm)
    tk = _pick_tile(S, min(kv_block_pref, S), qm)   # full-seq kv step for BERT-typical S
    grid = (num_groups, S // tq, S // tk)
    # TODO(synk): on v7x (2 TensorCores) ensure num_groups * (S // tq) >= 2 so
    # both cores get parallel work; holds for BERT-base shapes.

    kernel = functools.partial(_attn_kernel, heads_per_block=G, head_dim=head_dim)
    itemsize = jnp.dtype(qkv.dtype).itemsize
    n_q_blocks = S // tq
    return pl.pallas_call(
        kernel,
        out_shape=jax.ShapeDtypeStruct((S, H), qkv.dtype),
        grid_spec=pltpu.PrefetchScalarGridSpec(
            num_scalar_prefetch=0,
            grid=grid,
            in_specs=[
                # q / k / v column-block slices of the same (S, 3H) buffer.
                pl.BlockSpec((tq, gw), lambda h, qi, ki: (qi, h)),
                pl.BlockSpec((tk, gw), lambda h, qi, ki: (ki, num_groups + h)),
                pl.BlockSpec((tk, gw), lambda h, qi, ki: (ki, 2 * num_groups + h)),
            ],
            out_specs=pl.BlockSpec((tq, gw), lambda h, qi, ki: (qi, h)),
            scratch_shapes=[
                pltpu.VMEM((G, tq, 1), jnp.float32),          # running max m
                pltpu.VMEM((G, tq, 1), jnp.float32),          # running sum l
                pltpu.VMEM((G, tq, head_dim), jnp.float32),   # output accumulator
            ],
        ),
        compiler_params=pltpu.CompilerParams(
            dimension_semantics=("parallel", "parallel", "arbitrary"),
            vmem_limit_bytes=_vmem_limit_bytes(),
        ),
        cost_estimate=pl.CostEstimate(
            flops=4 * num_heads * S * S * head_dim,
            transcendentals=num_heads * S * S,
            # q read + (S/tq)-fold K/V re-read + output write.
            bytes_accessed=(S * H + 2 * n_q_blocks * S * H + S * H) * itemsize,
        ),
    )(qkv, qkv, qkv)
    # TODO(synk): for short encoder sequences, keeping projected K/V resident in
    # VMEM across q blocks (memory_space=pl.ANY + manual copy) would remove the
    # K/V re-read entirely; biggest payoff on v5e.


# ---------------------------------------------------------------------------
# Module-equivalent wrapper (QKVParallelLinear + Attention forward path).
# ---------------------------------------------------------------------------
class BertSelfAttentionPallas:
    def __init__(self, hidden_size: int, num_heads: int, key,
                 dtype=jnp.float32, compute_dtype=jnp.bfloat16):
        assert hidden_size % num_heads == 0
        self.hidden_size = hidden_size
        self.num_heads = num_heads
        self.num_kv_heads = num_heads
        self.head_dim = hidden_size // num_heads
        self.q_size = self.num_heads * self.head_dim
        self.kv_size = self.num_kv_heads * self.head_dim
        self.scaling = self.head_dim ** (-0.5)
        self.compute_dtype = compute_dtype

        k_w, k_b = jax.random.split(key)
        qkv_out = self.q_size + 2 * self.kv_size
        # Deterministic synthetic params (QKVParallelLinear: weight + bias).
        self.w_qkv = (jax.random.normal(k_w, (hidden_size, qkv_out), dtype)
                      * (1.0 / hidden_size ** 0.5))
        self.b_qkv = jax.random.normal(k_b, (1, qkv_out), dtype) * 0.01

        # Fold the softmax scale into the q columns once (offline transform)
        # and keep the kernel-side bf16 copies.
        scale_row = jnp.concatenate([
            jnp.full((self.q_size,), self.scaling, dtype),
            jnp.ones((2 * self.kv_size,), dtype),
        ])
        self.w_qkv_k = (self.w_qkv * scale_row[None, :]).astype(compute_dtype)
        self.b_qkv_k = (self.b_qkv * scale_row[None, :]).astype(compute_dtype)

    def __call__(self, hidden_states):
        # hidden_states: (S, H). No XLA-level split/reshape/transpose between
        # the two kernels — attention reads column slices of the QKV buffer.
        x = hidden_states.astype(self.compute_dtype)
        qkv = qkv_proj(x, self.w_qkv_k, self.b_qkv_k)           # (S, 3H) bf16
        out = mha_from_qkv(
            qkv, num_heads=self.num_heads, head_dim=self.head_dim
        )                                                       # (S, H) bf16
        return out.astype(hidden_states.dtype)
        # TODO(synk): kv_cache / AttentionMetadata (varlen batching, padding
        # masks) from the vLLM Attention backend are not modeled; this is the
        # single-sequence encoder path (kv_cache=None).


# ---------------------------------------------------------------------------
# References (pure JAX) for sanity checks.
# ---------------------------------------------------------------------------
def _attention_ref(module, qkv_f32, apply_scale):
    S = qkv_f32.shape[0]
    q, k, v = jnp.split(qkv_f32,
                        [module.q_size, module.q_size + module.kv_size], axis=-1)
    NH, D = module.num_heads, module.head_dim
    q = q.reshape(S, NH, D).transpose(1, 0, 2)
    k = k.reshape(S, NH, D).transpose(1, 0, 2)
    v = v.reshape(S, NH, D).transpose(1, 0, 2)
    s = jnp.einsum("hqd,hkd->hqk", q, k)
    if apply_scale:
        s = s * module.scaling
    p = jax.nn.softmax(s, axis=-1)
    o = jnp.einsum("hqk,hkd->hqd", p, v)
    return o.transpose(1, 0, 2).reshape(S, NH * D)


def reference_fp32(module, x):
    qkv = x @ module.w_qkv + module.b_qkv
    return _attention_ref(module, qkv, apply_scale=True)


def reference_bf16_flow(module, x):
    # Mimics the kernel's dtype flow (bf16 operands, f32 accumulation) to
    # isolate kernel bugs from quantization error.
    cd = module.compute_dtype
    xq = x.astype(cd).astype(jnp.float32)
    w = module.w_qkv_k.astype(jnp.float32)
    b = module.b_qkv_k.astype(jnp.float32)
    qkv = (xq @ w + b).astype(cd).astype(jnp.float32)
    return _attention_ref(module, qkv, apply_scale=False)   # scale pre-folded


if __name__ == "__main__":
    key = jax.random.PRNGKey(0)
    k_param, k_x = jax.random.split(key)

    # Small but BERT-shaped: head_dim = 64 so head groups are lane-dense.
    hidden_size = 256
    num_heads = 4
    seq_len = 128

    module = BertSelfAttentionPallas(hidden_size, num_heads, k_param)
    hidden_states = jax.random.normal(k_x, (seq_len, hidden_size), jnp.float32)

    out = jax.block_until_ready(module(hidden_states))
    assert out.shape == (seq_len, hidden_size)
    out32 = out.astype(jnp.float32)

    ref_flow = reference_bf16_flow(module, hidden_states)
    ref_f32 = reference_fp32(module, hidden_states)

    err_flow = float(jnp.max(jnp.abs(out32 - ref_flow)))
    err_f32 = float(jnp.max(jnp.abs(out32 - ref_f32)))
    # Tight check vs. the matching-dtype-flow reference (catches kernel bugs).
    assert jnp.allclose(out32, ref_flow, atol=2e-2, rtol=2e-2), f"flow max_err={err_flow}"
    # Loose check vs. the full-f32 reference (bf16 quantization headroom).
    assert jnp.allclose(out32, ref_f32, atol=1e-1, rtol=1e-1), f"f32 max_err={err_f32}"

    print("KERNEL_OK")
</pallas_src>

<mosaic_0001>
module attributes {stable_mosaic.version = 11 : i64} {
  func.func @_qkv_kernel(%arg0: i32, %arg1: i32, %arg2: i32, %arg3: memref<128x256xbf16, #tpu.memory_space<vmem>>, %arg4: memref<256x768xbf16, #tpu.memory_space<vmem>>, %arg5: memref<1x768xbf16, #tpu.memory_space<vmem>>, %arg6: memref<128x768xbf16, #tpu.memory_space<vmem>>, %arg7: memref<128x768xf32, #tpu.memory_space<vmem>>) attributes {dimension_semantics = [#tpu.dimension_semantics<parallel>, #tpu.dimension_semantics<parallel>, #tpu.dimension_semantics<arbitrary>], iteration_bounds = array<i64: 1, 1, 1>, scalar_prefetch = 0 : i64, scratch_operands = 1 : i64, tpu.core_type = #tpu.core_type<tc>, window_params = [{transform_indices = @transform_0, window_bounds = array<i64: 128, 256>}, {transform_indices = @transform_1, window_bounds = array<i64: 256, 768>}, {transform_indices = @transform_2, window_bounds = array<i64: 1, 768>}, {transform_indices = @transform_3, window_bounds = array<i64: 128, 768>}]} {
    %c0_i32 = arith.constant 0 : i32
    %0 = arith.cmpi eq, %arg2, %c0_i32 : i32
    %1 = arith.extui %0 : i1 to i32
    %c0_i32_0 = arith.constant 0 : i32
    %2 = arith.cmpi ne, %1, %c0_i32_0 : i32
    scf.if %2 {
      %cst_10 = arith.constant 0.000000e+00 : f32
      %12 = vector.broadcast %cst_10 : f32 to vector<128x768xf32>
      %c0_11 = arith.constant 0 : index
      %c0_12 = arith.constant 0 : index
      %13 = vector.load %arg7[%c0_11, %c0_12] : memref<128x768xf32, #tpu.memory_space<vmem>>, vector<128x768xf32>
      tpu.vector_store %arg7[%c0_11, %c0_12], %12 {strides = array<i32>} : memref<128x768xf32, #tpu.memory_space<vmem>>, vector<128x768xf32>,
    } else {
    }
    %c0 = arith.constant 0 : index
    %c0_1 = arith.constant 0 : index
    %3 = vector.load %arg7[%c0, %c0_1] : memref<128x768xf32, #tpu.memory_space<vmem>>, vector<128x768xf32>
    %c0_2 = arith.constant 0 : index
    %c0_3 = arith.constant 0 : index
    %4 = vector.load %arg3[%c0_2, %c0_3] : memref<128x256xbf16, #tpu.memory_space<vmem>>, vector<128x256xbf16>
    %c0_4 = arith.constant 0 : index
    %c0_5 = arith.constant 0 : index
    %5 = vector.load %arg4[%c0_4, %c0_5] : memref<256x768xbf16, #tpu.memory_space<vmem>>, vector<256x768xbf16>
    %cst = arith.constant dense<0.000000e+00> : vector<128x768xf32>
    %6 = tpu.matmul %4, %5, %cst {dimension_numbers = #tpu.dot_dimension_numbers<[1], [0], [0], [1], [0, 0, 1, 1], [], []>} : vector<128x256xbf16>, vector<256x768xbf16>, vector<128x768xf32> -> vector<128x768xf32>
    %7 = arith.addf %3, %6 : vector<128x768xf32>
    %c0_6 = arith.constant 0 : index
    %c0_7 = arith.constant 0 : index
    %8 = vector.load %arg7[%c0_6, %c0_7] : memref<128x768xf32, #tpu.memory_space<vmem>>, vector<128x768xf32>
    tpu.vector_store %arg7[%c0_6, %c0_7], %7 {strides = array<i32>} : memref<128x768xf32, #tpu.memory_space<vmem>>, vector<128x768xf32>,
    %c0_i32_8 = arith.constant 0 : i32
    %9 = arith.cmpi eq, %arg2, %c0_i32_8 : i32
    %10 = arith.extui %9 : i1 to i32
    %c0_i32_9 = arith.constant 0 : i32
    %11 = arith.cmpi ne, %10, %c0_i32_9 : i32
    scf.if %11 {
      %c0_10 = arith.constant 0 : index
      %c0_11 = arith.constant 0 : index
      %12 = vector.load %arg7[%c0_10, %c0_11] : memref<128x768xf32, #tpu.memory_space<vmem>>, vector<128x768xf32>
      %c0_12 = arith.constant 0 : index
      %c0_13 = arith.constant 0 : index
      %13 = vector.load %arg5[%c0_12, %c0_13] : memref<1x768xbf16, #tpu.memory_space<vmem>>, vector<1x768xbf16>
      %14 = arith.extf %13 : vector<1x768xbf16> to vector<1x768xf32>
      %15 = vector.broadcast %14 : vector<1x768xf32> to vector<128x768xf32>
      %16 = arith.addf %12, %15 : vector<128x768xf32>
      %17 = arith.truncf %16 : vector<128x768xf32> to vector<128x768xbf16>
      %c0_14 = arith.constant 0 : index
      %c0_15 = arith.constant 0 : index
      %18 = vector.load %arg6[%c0_14, %c0_15] : memref<128x768xbf16, #tpu.memory_space<vmem>>, vector<128x768xbf16>
      tpu.vector_store %arg6[%c0_14, %c0_15], %17 {strides = array<i32>} : memref<128x768xbf16, #tpu.memory_space<vmem>>, vector<128x768xbf16>,
    } else {
    }
    return
  }
  func.func @transform_0(%arg0: i32, %arg1: i32, %arg2: i32) -> (i32, i32) {
    %c0_i32 = arith.constant 0 : i32
    return %arg0, %arg2 : i32, i32
  }
  func.func @transform_1(%arg0: i32, %arg1: i32, %arg2: i32) -> (i32, i32) {
    %c0_i32 = arith.constant 0 : i32
    return %arg2, %arg1 : i32, i32
  }
  func.func @transform_2(%arg0: i32, %arg1: i32, %arg2: i32) -> (i32, i32) {
    %c0_i32 = arith.constant 0 : i32
    %c0_i32_0 = arith.constant 0 : i32
    return %c0_i32, %arg1 : i32, i32
  }
  func.func @transform_3(%arg0: i32, %arg1: i32, %arg2: i32) -> (i32, i32) {
    %c0_i32 = arith.constant 0 : i32
    return %arg0, %arg1 : i32, i32
  }
}

</mosaic_0001>

<bundles_post_ra>
// kernel: tpu_custom_call.1
= control target key start
LH: loop header
LB: loop body
LE: loop exit
PB: predicated region body
PF: predicated region fallthrough
CT: control target
= control target key end

     0   :  { %8 = vsyncpa [#allocation4], 0  ;;  %s3004_s0 = inlined_call_operand.hbm [shape: bf16[128,256], index: 0, kind: input, shape index: {}]   ;;  %s3005_s1 = inlined_call_operand.hbm [shape: bf16[256,768], index: 1, kind: input, shape index: {}]   ;;  %s3006_s2 = inlined_call_operand.hbm [shape: bf16[1,768], index: 2, kind: input, shape index: {}]   ;;  %s3007_s3 = inlined_call_operand.hbm [shape: bf16[128,768], index: 3, kind: output, shape index: {}]  }
   0x1   :  { %9 = vsyncpa [#allocation7], 0  ;;  %s28_s14 = sshll.u32 %s3005_s1, 4  ;;  %s29_s14 = int_to_ptr.hbm [resolvable:$true] %s28_s14 }
   0x2   :  { %10 = vsyncpa [#allocation5], 0  ;;  %s2712_s15 = smov [#allocation6]   ;;  %s15_s19 = sshll.u32 %s3004_s0, 4  ;;  %s16_s19 = int_to_ptr.hbm [resolvable:$true] %s15_s19 }
   0x3   :  { %s30_s16 = sshll.u32 %s2712_s15, 4  ;;  %s2713_s20 = smov 384   ;;  %s31_s16 = int_to_ptr.vmem [resolvable:$true] %s30_s16 }
   0x4   :  { %s2714_s21 = smov 24   ;;  %s2715_s22 = smov [#allocation3]  }
   0x5   :  { %36 = dma.hbm_to_vmem [thread:$0]  %s29_s14, 12288, %s31_s16, [#allocation7], %s2713_s20, %s2713_s20, %s2714_s21  }
   0x6   :  { %s17_s23 = sshll.u32 %s2715_s22, 4  ;;  %s2716_s1 = smov 128   ;;  %s18_s23 = int_to_ptr.vmem [resolvable:$true] %s17_s23 }
   0x7   :  { %s2717_s24 = smov 8   ;;  %s42_s27 = sshll.u32 %s3006_s2, 4  ;;  %s43_s27 = int_to_ptr.hbm [resolvable:$true] %s42_s27 }
   0x8   :  { %23 = dma.hbm_to_vmem [thread:$0]  %s16_s19, 2048, %s18_s23, [#allocation4], %s2716_s1, %s2716_s1, %s2717_s24  }
   0x9   :  { %s2718_s28 = smov [#allocation8]  }
   0xa   :  { %s44_s0 = sshll.u32 %s2718_s28, 4  ;;  %s45_s0 = int_to_ptr.vmem [resolvable:$true] %s44_s0 }
   0xb   :  { %47 = dma.hbm_to_vmem [thread:$0]  %s43_s27, 96, %s45_s0, [#allocation7]  }
   0xc   :  { %2706 = dma.done.wait [#allocation4], 2048  }
   0xd   :  { %2707 = vsyncadd [#allocation4], 4294965248 }
   0xe   :  { %2708 = dma.done.wait [#allocation7], 12384  }
   0xf   :  { %2709 = vsyncadd [#allocation7], 4294954912  ;;  %v2276_v0 = vld [vmem:[#allocation6 + $0x150] sm:$0xf]  ;;  %v2551_v1 = vld [vmem:[#allocation6 + $0x164] sm:$0xf0] }
  0x10   :  { %v2468_v2 = vld [vmem:[#allocation6 + $0x2d0] sm:$0xf]  ;;  %v2277_v3 = vor.u32 %v2551_v1, %v2276_v0  ;;  %v2599_v4 = vld [vmem:[#allocation6 + $0x2e4] sm:$0xf0]  ;;  %v2548_v5 = vld [vmem:[#allocation6 + $0x154] sm:$0xf] }
  0x11   :  { %v2278_v6 = vld [vmem:[#allocation6 + $0x168] sm:$0xf0]  ;;  %v2469_v7 = vor.u32 %v2599_v4, %v2468_v2  ;;  %v2596_v9 = vld [vmem:[#allocation6 + $0x2d4] sm:$0xf]  ;;  %v2252_v11 = vld [vmem:[#allocation6 + $0x120] sm:$0xf] }
  0x12   :  { %v2281_v8 = vor.u32 %v2548_v5, %v2278_v6  ;;  %v2470_v10 = vld [vmem:[#allocation6 + $0x2e8] sm:$0xf0]  ;;  %928 = vmatpush.bf16.msra.mxu0 %v2277_v3  ;;  %v2545_v13 = vld [vmem:[#allocation6 + $0x134] sm:$0xf0]  ;;  %v2444_v14 = vld [vmem:[#allocation6 + $0x2a0] sm:$0xf] }
  0x13   :  { %v2473_v12 = vor.u32 %v2596_v9, %v2470_v10  ;;  %v2593_v15 = vld [vmem:[#allocation6 + $0x2b4] sm:$0xf0]  ;;  %977 = vmatpush.bf16.msra.mxu1 %v2469_v7  ;;  %v2253_v16 = vor.u32 %v2545_v13, %v2252_v11  ;;  %v2542_v18 = vld [vmem:[#allocation6 + $0x124] sm:$0xf]  ;;  %v2254_v19 = vld [vmem:[#allocation6 + $0x138] sm:$0xf0] }
  0x14   :  { %1026 = vmatpush.bf16.msra.mxu2 %v2281_v8  ;;  %v2445_v17 = vor.u32 %v2593_v15, %v2444_v14  ;;  %v2590_v20 = vld [vmem:[#allocation6 + $0x2a4] sm:$0xf]  ;;  %v2257_v21 = vor.u32 %v2542_v18, %v2254_v19  ;;  %v2446_v22 = vld [vmem:[#allocation6 + $0x2b8] sm:$0xf0]  ;;  %v2228_v23 = vld [vmem:[#allocation6 + $0xf0] sm:$0xf] }
  0x15   :  { %1075 = vmatpush.bf16.msra.mxu3 %v2473_v12  ;;  %v2539_v24 = vld [vmem:[#allocation6 + $0x104] sm:$0xf0]  ;;  %v2449_v25 = vor.u32 %v2590_v20, %v2446_v22  ;;  %v2420_v26 = vld [vmem:[#allocation6 + $0x270] sm:$0xf]  ;;  %v2536_v28 = vld [vmem:[#allocation6 + $0xf4] sm:$0xf] }
  0x16   :  { %v2587_v27 = vld [vmem:[#allocation6 + $0x284] sm:$0xf0]  ;;  %929 = vmatpush.bf16.msra.mxu0 %v2253_v16  ;;  %v2229_v29 = vor.u32 %v2539_v24, %v2228_v23  ;;  %v2230_v30 = vld [vmem:[#allocation6 + $0x108] sm:$0xf0]  ;;  %v2584_v31 = vld [vmem:[#allocation6 + $0x274] sm:$0xf] }
  0x17   :  { %v2422_v32 = vld [vmem:[#allocation6 + $0x288] sm:$0xf0]  ;;  %978 = vmatpush.bf16.msra.mxu1 %v2445_v17  ;;  %v2421_v33 = vor.u32 %v2587_v27, %v2420_v26  ;;  %v2233_v34 = vor.u32 %v2536_v28, %v2230_v30  ;;  %v2204_v35 = vld [vmem:[#allocation6 + $0xc0] sm:$0xf]  ;;  %v2533_v36 = vld [vmem:[#allocation6 + $0xd4] sm:$0xf0] }
  0x18   :  { %1027 = vmatpush.bf16.msra.mxu2 %v2257_v21  ;;  %v2396_v37 = vld [vmem:[#allocation6 + $0x240] sm:$0xf]  ;;  %v2425_v38 = vor.u32 %v2584_v31, %v2422_v32  ;;  %v2581_v39 = vld [vmem:[#allocation6 + $0x254] sm:$0xf0]  ;;  %v2530_v40 = vld [vmem:[#allocation6 + $0xc4] sm:$0xf]  ;;  %v2205_v44 = vor.u32 %v2533_v36, %v2204_v35 }
  0x19   :  { %1076 = vmatpush.bf16.msra.mxu3 %v2449_v25  ;;  %v2206_v41 = vld [vmem:[#allocation6 + $0xd8] sm:$0xf0]  ;;  %v2578_v42 = vld [vmem:[#allocation6 + $0x244] sm:$0xf]  ;;  %v2397_v45 = vor.u32 %v2581_v39, %v2396_v37  ;;  %v2180_v47 = vld [vmem:[#allocation6 + $0x90] sm:$0xf] }
  0x1a   :  { %v2398_v43 = vld [vmem:[#allocation6 + $0x258] sm:$0xf0]  ;;  %930 = vmatpush.bf16.msra.mxu0 %v2229_v29  ;;  %v2209_v46 = vor.u32 %v2530_v40, %v2206_v41  ;;  %v2527_v48 = vld [vmem:[#allocation6 + $0xa4] sm:$0xf0]  ;;  %v2372_v49 = vld [vmem:[#allocation6 + $0x210] sm:$0xf] }
  0x1b   :  { %979 = vmatpush.bf16.msra.mxu1 %v2421_v33  ;;  %v2401_v50 = vor.u32 %v2578_v42, %v2398_v43  ;;  %v2575_v51 = vld [vmem:[#allocation6 + $0x224] sm:$0xf0]  ;;  %v2524_v52 = vld [vmem:[#allocation6 + $0x94] sm:$0xf]  ;;  %v2182_v53 = vld [vmem:[#allocation6 + $0xa8] sm:$0xf0]  ;;  %v2181_v56 = vor.u32 %v2527_v48, %v2180_v47 }
  0x1c   :  { %1028 = vmatpush.bf16.msra.mxu2 %v2233_v34  ;;  %v2572_v54 = vld [vmem:[#allocation6 + $0x214] sm:$0xf]  ;;  %v2374_v55 = vld [vmem:[#allocation6 + $0x228] sm:$0xf0]  ;;  %v2373_v57 = vor.u32 %v2575_v51, %v2372_v49  ;;  %v2185_v58 = vor.u32 %v2524_v52, %v2182_v53  ;;  %v2156_v59 = vld [vmem:[#allocation6 + $0x60] sm:$0xf] }
  0x1d   :  { %1077 = vmatpush.bf16.msra.mxu3 %v2425_v38  ;;  %v2521_v60 = vld [vmem:[#allocation6 + $0x74] sm:$0xf0]  ;;  %v2348_v61 = vld [vmem:[#allocation6 + $0x1e0] sm:$0xf]  ;;  %v2377_v62 = vor.u32 %v2572_v54, %v2374_v55  ;;  %v2518_v0 = vld [vmem:[#allocation6 + $0x64] sm:$0xf] }
  0x1e   :  { %931 = vmatpush.bf16.msra.mxu0 %v2205_v44  ;;  %v2569_v63 = vld [vmem:[#allocation6 + $0x1f4] sm:$0xf0]  ;;  %v2158_v1 = vld [vmem:[#allocation6 + $0x78] sm:$0xf0]  ;;  %v2566_v2 = vld [vmem:[#allocation6 + $0x1e4] sm:$0xf]  ;;  %v2157_v4 = vor.u32 %v2521_v60, %v2156_v59 }
  0x1f   :  { %980 = vmatpush.bf16.msra.mxu1 %v2397_v45  ;;  %v2350_v3 = vld [vmem:[#allocation6 + $0x1f8] sm:$0xf0]  ;;  %v2349_v5 = vor.u32 %v2569_v63, %v2348_v61  ;;  %v2161_v6 = vor.u32 %v2518_v0, %v2158_v1  ;;  %v2132_v7 = vld [vmem:[#allocation6 + $0x30] sm:$0xf]  ;;  %v2515_v8 = vld [vmem:[#allocation6 + $0x44] sm:$0xf0] }
  0x20   :  { %1029 = vmatpush.bf16.msra.mxu2 %v2209_v46  ;;  %v2324_v9 = vld [vmem:[#allocation6 + $0x1b0] sm:$0xf]  ;;  %v2353_v10 = vor.u32 %v2566_v2, %v2350_v3  ;;  %v2563_v11 = vld [vmem:[#allocation6 + $0x1c4] sm:$0xf0]  ;;  %v2512_v12 = vld [vmem:[#allocation6 + $0x34] sm:$0xf]  ;;  %v2133_v16 = vor.u32 %v2515_v8, %v2132_v7 }
  0x21   :  { %1078 = vmatpush.bf16.msra.mxu3 %v2401_v50  ;;  %v2134_v13 = vld [vmem:[#allocation6 + $0x48] sm:$0xf0]  ;;  %v2560_v14 = vld [vmem:[#allocation6 + $0x1b4] sm:$0xf]  ;;  %v2108_v17 = vld [vmem:[#allocation6] sm:$0xf]  ;;  %v2325_v19 = vor.u32 %v2563_v11, %v2324_v9 }
  0x22   :  { %932 = vmatpush.bf16.msra.mxu0 %v2181_v56  ;;  %v2326_v15 = vld [vmem:[#allocation6 + $0x1c8] sm:$0xf0]  ;;  %v2509_v18 = vld [vmem:[#allocation6 + $0x14] sm:$0xf0]  ;;  %v2137_v20 = vor.u32 %v2512_v12, %v2134_v13  ;;  %v2300_v21 = vld [vmem:[#allocation6 + $0x180] sm:$0xf] }
  0x23   :  { %981 = vmatpush.bf16.msra.mxu1 %v2373_v57  ;;  %v2557_v22 = vld [vmem:[#allocation6 + $0x194] sm:$0xf0]  ;;  %v2506_v23 = vld [vmem:[#allocation6 + $0x4] sm:$0xf]  ;;  %v2329_v24 = vor.u32 %v2560_v14, %v2326_v15  ;;  %v2110_v25 = vld [vmem:[#allocation6 + $0x18] sm:$0xf0]  ;;  %v2109_v31 = vor.u32 %v2509_v18, %v2108_v17 }
  0x24   :  { %1030 = vmatpush.bf16.msra.mxu2 %v2185_v58  ;;  %v2554_v26 = vld [vmem:[#allocation6 + $0x184] sm:$0xf]  ;;  %v2302_v27 = vld [vmem:[#allocation6 + $0x198] sm:$0xf0]  ;;  %v2044_v28 = vld [vmem:[#allocation3] sm:$0xf]  ;;  %v2301_v35 = vor.u32 %v2557_v22, %v2300_v21  ;;  %v2113_v36 = vor.u32 %v2506_v23, %v2110_v25 }
  0x25   :  { %1079 = vmatpush.bf16.msra.mxu3 %v2377_v62  ;;  %v2549_v29 = vld [vmem:[#allocation6 + $0x15c] sm:$0xf]  ;;  %v2286_v30 = vld [vmem:[#allocation6 + $0x170] sm:$0xf0]  ;;  %v2491_v32 = vld [vmem:[#allocation3 + $0x4] sm:$0xf0]  ;;  %v2305_v39 = vor.u32 %v2554_v26, %v2302_v27 }
  0x26   :  { %933 = vmatpush.bf16.msra.mxu0 %v2157_v4  ;;  %v2597_v33 = vld [vmem:[#allocation6 + $0x2dc] sm:$0xf]  ;;  %v2478_v34 = vld [vmem:[#allocation6 + $0x2f0] sm:$0xf0]  ;;  %v2490_v37 = vld [vmem:[#allocation3 + $0x4] sm:$0xf]  ;;  %v2289_v40 = vor.u32 %v2549_v29, %v2286_v30  ;;  %v2752_v44 = vor.u32 %v2491_v32, %v2044_v28 }
  0x27   :  { %982 = vmatpush.bf16.msra.mxu1 %v2349_v5  ;;  %v2046_v38 = vld [vmem:[#allocation3 + $0x8] sm:$0xf0]  ;;  %v2284_v41 = vld [vmem:[#allocation6 + $0x158] sm:$0xf]  ;;  %v2552_v42 = vld [vmem:[#allocation6 + $0x16c] sm:$0xf0]  ;;  %v2481_v45 = vor.u32 %v2597_v33, %v2478_v34 }
  0x28   :  { %1031 = vmatpush.bf16.msra.mxu2 %v2161_v6  ;;  %v2476_v43 = vld [vmem:[#allocation6 + $0x2d8] sm:$0xf]  ;;  %v2600_v46 = vld [vmem:[#allocation6 + $0x2ec] sm:$0xf0]  ;;  %v2543_v47 = vld [vmem:[#allocation6 + $0x12c] sm:$0xf]  ;;  %v2754_v49 = vor.u32 %v2490_v37, %v2046_v38  ;;  %v2285_v52 = vor.u32 %v2552_v42, %v2284_v41 }
  0x29   :  { %1080 = vmatpush.bf16.msra.mxu3 %v2353_v10  ;;  %v2262_v48 = vld [vmem:[#allocation6 + $0x140] sm:$0xf0]  ;;  %v2591_v50 = vld [vmem:[#allocation6 + $0x2ac] sm:$0xf]  ;;  %v2477_v53 = vor.u32 %v2600_v46, %v2476_v43  ;;  %v2260_v55 = vld [vmem:[#allocation6 + $0x128] sm:$0xf] }
  0x2a   :  { %934 = vmatpush.bf16.msra.mxu0 %v2133_v16  ;;  %v2454_v51 = vld [vmem:[#allocation6 + $0x2c0] sm:$0xf0]  ;;  %v2265_v54 = vor.u32 %v2543_v47, %v2262_v48  ;;  %v2546_v56 = vld [vmem:[#allocation6 + $0x13c] sm:$0xf0]  ;;  %v2452_v58 = vld [vmem:[#allocation6 + $0x2a8] sm:$0xf] }
  0x2b   :  { %983 = vmatpush.bf16.msra.mxu1 %v2325_v19  ;;  %v2457_v57 = vor.u32 %v2591_v50, %v2454_v51  ;;  %v2594_v59 = vld [vmem:[#allocation6 + $0x2bc] sm:$0xf0]  ;;  %v2261_v60 = vor.u32 %v2546_v56, %v2260_v55  ;;  %v2537_v61 = vld [vmem:[#allocation6 + $0xfc] sm:$0xf]  ;;  %v2238_v62 = vld [vmem:[#allocation6 + $0x110] sm:$0xf0] }
  0x2c   :  { %1032 = vmatpush.bf16.msra.mxu2 %v2137_v20  ;;  %v2585_v63 = vld [vmem:[#allocation6 + $0x27c] sm:$0xf]  ;;  %v2453_v0 = vor.u32 %v2594_v59, %v2452_v58  ;;  %v2241_v1 = vor.u32 %v2537_v61, %v2238_v62  ;;  %v2430_v2 = vld [vmem:[#allocation6 + $0x290] sm:$0xf0]  ;;  %v2236_v3 = vld [vmem:[#allocation6 + $0xf8] sm:$0xf] }
  0x2d   :  { %1081 = vmatpush.bf16.msra.mxu3 %v2329_v24  ;;  %v2540_v4 = vld [vmem:[#allocation6 + $0x10c] sm:$0xf0]  ;;  %v2433_v5 = vor.u32 %v2585_v63, %v2430_v2  ;;  %v2428_v6 = vld [vmem:[#allocation6 + $0x278] sm:$0xf]  ;;  %v2492_v12 = vld [vmem:[#allocation3 + $0x14] sm:$0xf] }
  0x2e   :  { %935 = vmatpush.bf16.msra.mxu0 %v2109_v31  ;;  %v2588_v7 = vld [vmem:[#allocation6 + $0x28c] sm:$0xf0]  ;;  %v2237_v8 = vor.u32 %v2540_v4, %v2236_v3  ;;  %v2493_v11 = vld [vmem:[#allocation3 + $0x14] sm:$0xf0]  ;;  %v2054_v13 = vld [vmem:[#allocation3 + $0x18] sm:$0xf0] }
  0x2f   :  { %984 = vmatpush.bf16.msra.mxu1 %v2301_v35  ;;  %v2429_v9 = vor.u32 %v2588_v7, %v2428_v6  ;;  %v2052_v10 = vld [vmem:[#allocation3 + $0x10] sm:$0xf]  ;;  %v2762_v15 = vor.u32 %v2492_v12, %v2054_v13  ;;  %v2531_v16 = vld [vmem:[#allocation6 + $0xcc] sm:$0xf]  ;;  %v2214_v17 = vld [vmem:[#allocation6 + $0xe0] sm:$0xf0] }
  0x30   :  { %1033 = vmatpush.bf16.msra.mxu2 %v2113_v36  ;;  %v2760_v14 = vor.u32 %v2493_v11, %v2052_v10  ;;  %v2579_v18 = vld [vmem:[#allocation6 + $0x24c] sm:$0xf]  ;;  %v2217_v19 = vor.u32 %v2531_v16, %v2214_v17  ;;  %v2406_v20 = vld [vmem:[#allocation6 + $0x260] sm:$0xf0]  ;;  %v2212_v21 = vld [vmem:[#allocation6 + $0xc8] sm:$0xf] }
  0x31   :  { %1082 = vmatpush.bf16.msra.mxu3 %v2305_v39  ;;  %936 = vmatmul.bf16.vlgmr.msra.gmra.mxu0 %v2752_v44  ;;  %v2534_v22 = vld [vmem:[#allocation6 + $0xdc] sm:$0xf0]  ;;  %v2409_v23 = vor.u32 %v2579_v18, %v2406_v20  ;;  %v2404_v25 = vld [vmem:[#allocation6 + $0x248] sm:$0xf]  ;;  %v2494_v30 = vld [vmem:[#allocation3 + $0x24] sm:$0xf] }
  0x32   :  { %985 = vmatmul.bf16.vlgmr.msra.gmra.mxu1 %v2754_v49  ;;  %1124 = vmatpush.bf16.msrb.mxu0 %v2285_v52  ;;  %v2213_v24 = vor.u32 %v2534_v22, %v2212_v21  ;;  %v2582_v26 = vld [vmem:[#allocation6 + $0x25c] sm:$0xf0]  ;;  %v2495_v29 = vld [vmem:[#allocation3 + $0x24] sm:$0xf0]  ;;  %v2062_v31 = vld [vmem:[#allocation3 + $0x28] sm:$0xf0] }
  0x33   :  { %1034 = vmatmul.bf16.vlgmr.msra.gmra.mxu2 %v2752_v44  ;;  %1173 = vmatpush.bf16.msrb.mxu1 %v2477_v53  ;;  %v2405_v27 = vor.u32 %v2582_v26, %v2404_v25  ;;  %v2060_v28 = vld [vmem:[#allocation3 + $0x20] sm:$0xf]  ;;  %v2770_v33 = vor.u32 %v2494_v30, %v2062_v31  ;;  %v2525_v34 = vld [vmem:[#allocation6 + $0x9c] sm:$0xf]  ;;  %v2190_v35 = vld [vmem:[#allocation6 + $0xb0] sm:$0xf0] }
  0x34   :  { %1222 = vmatpush.bf16.msrb.mxu2 %v2289_v40  ;;  %1083 = vmatmul.bf16.vlgmr.msra.gmra.mxu3 %v2754_v49  ;;  %v2768_v32 = vor.u32 %v2495_v29, %v2060_v28  ;;  %v2573_v36 = vld [vmem:[#allocation6 + $0x21c] sm:$0xf]  ;;  %v2193_v37 = vor.u32 %v2525_v34, %v2190_v35  ;;  %v2382_v38 = vld [vmem:[#allocation6 + $0x230] sm:$0xf0]  ;;  %v2188_v39 = vld [vmem:[#allocation6 + $0x98] sm:$0xf] }
  0x35   :  { %1271 = vmatpush.bf16.msrb.mxu3 %v2481_v45  ;;  %v2528_v40 = vld [vmem:[#allocation6 + $0xac] sm:$0xf0]  ;;  %v2385_v41 = vor.u32 %v2573_v36, %v2382_v38  ;;  %v2380_v43 = vld [vmem:[#allocation6 + $0x218] sm:$0xf]  ;;  %v2496_v50 = vld [vmem:[#allocation3 + $0x34] sm:$0xf] }
  0x36   :  { %1125 = vmatpush.bf16.msrb.mxu0 %v2261_v60  ;;  %v2189_v42 = vor.u32 %v2528_v40, %v2188_v39  ;;  %v2576_v45 = vld [vmem:[#allocation6 + $0x22c] sm:$0xf0]  ;;  %v2497_v48 = vld [vmem:[#allocation3 + $0x34] sm:$0xf0]  ;;  %v2070_v51 = vld [vmem:[#allocation3 + $0x38] sm:$0xf0] }
  0x37   :  { %1174 = vmatpush.bf16.msrb.mxu1 %v2453_v0  ;;  %v2381_v46 = vor.u32 %v2576_v45, %v2380_v43  ;;  %v2068_v47 = vld [vmem:[#allocation3 + $0x30] sm:$0xf]  ;;  %v2778_v53 = vor.u32 %v2496_v50, %v2070_v51  ;;  %v2166_v55 = vld [vmem:[#allocation6 + $0x80] sm:$0xf0]  ;;  %v2567_v56 = vld [vmem:[#allocation6 + $0x1ec] sm:$0xf] }
  0x38   :  { %1223 = vmatpush.bf16.msrb.mxu2 %v2265_v54  ;;  %v2776_v52 = vor.u32 %v2497_v48, %v2068_v47  ;;  %v2519_v54 = vld [vmem:[#allocation6 + $0x6c] sm:$0xf]  ;;  %v2358_v58 = vld [vmem:[#allocation6 + $0x200] sm:$0xf0]  ;;  %v2164_v59 = vld [vmem:[#allocation6 + $0x68] sm:$0xf] }
  0x39   :  { %1272 = vmatpush.bf16.msrb.mxu3 %v2457_v57  ;;  %v2169_v57 = vor.u32 %v2519_v54, %v2166_v55  ;;  %v2522_v60 = vld [vmem:[#allocation6 + $0x7c] sm:$0xf0]  ;;  %v2361_v61 = vor.u32 %v2567_v56, %v2358_v58  ;;  %v2356_v63 = vld [vmem:[#allocation6 + $0x1e8] sm:$0xf]  ;;  %v2498_v4 = vld [vmem:[#allocation3 + $0x44] sm:$0xf] }
  0x3a   :  { %1126 = vmatpush.bf16.msrb.mxu0 %v2237_v8  ;;  %v2165_v62 = vor.u32 %v2522_v60, %v2164_v59  ;;  %v2570_v0 = vld [vmem:[#allocation6 + $0x1fc] sm:$0xf0]  ;;  %v2499_v3 = vld [vmem:[#allocation3 + $0x44] sm:$0xf0]  ;;  %v2513_v8 = vld [vmem:[#allocation6 + $0x3c] sm:$0xf] }
  0x3b   :  { %1175 = vmatpush.bf16.msrb.mxu1 %v2429_v9  ;;  %v2076_v2 = vld [vmem:[#allocation3 + $0x40] sm:$0xf]  ;;  %v2142_v9 = vld [vmem:[#allocation6 + $0x50] sm:$0xf0]  ;;  %v2561_v10 = vld [vmem:[#allocation6 + $0x1bc] sm:$0xf] }
  0x3c   :  { %1224 = vmatpush.bf16.msrb.mxu2 %v2241_v1  ;;  %v2357_v1 = vor.u32 %v2570_v0, %v2356_v63  ;;  %v2784_v6 = vor.u32 %v2499_v3, %v2076_v2  ;;  %v2145_v11 = vor.u32 %v2513_v8, %v2142_v9  ;;  %v2334_v12 = vld [vmem:[#allocation6 + $0x1d0] sm:$0xf0]  ;;  %v2140_v13 = vld [vmem:[#allocation6 + $0x38] sm:$0xf]  ;;  %v2516_v16 = vld [vmem:[#allocation6 + $0x4c] sm:$0xf0] }
  0x3d   :  { %1273 = vmatpush.bf16.msrb.mxu3 %v2433_v5  ;;  %v2078_v5 = vld [vmem:[#allocation3 + $0x48] sm:$0xf0]  ;;  %v2337_v17 = vor.u32 %v2561_v10, %v2334_v12  ;;  %v2141_v18 = vor.u32 %v2516_v16, %v2140_v13  ;;  %v2564_v20 = vld [vmem:[#allocation6 + $0x1cc] sm:$0xf0]  ;;  %v2086_v25 = vld [vmem:[#allocation3 + $0x58] sm:$0xf0] }
  0x3e   :  { %1127 = vmatpush.bf16.msrb.mxu0 %v2213_v24  ;;  %v2786_v7 = vor.u32 %v2498_v4, %v2078_v5  ;;  %v2084_v22 = vld [vmem:[#allocation3 + $0x50] sm:$0xf]  ;;  %v2500_v24 = vld [vmem:[#allocation3 + $0x54] sm:$0xf]  ;;  %v2507_v28 = vld [vmem:[#allocation6 + $0xc] sm:$0xf] }
  0x3f   :  { %1176 = vmatpush.bf16.msrb.mxu1 %v2405_v27  ;;  %v2794_v27 = vor.u32 %v2500_v24, %v2086_v25  ;;  %v2118_v29 = vld [vmem:[#allocation6 + $0x20] sm:$0xf0]  ;;  %v2555_v30 = vld [vmem:[#allocation6 + $0x18c] sm:$0xf]  ;;  %v2116_v35 = vld [vmem:[#allocation6 + $0x8] sm:$0xf] }
  0x40   :  { %1225 = vmatpush.bf16.msrb.mxu2 %v2217_v19  ;;  %v2332_v19 = vld [vmem:[#allocation6 + $0x1b8] sm:$0xf]  ;;  %v2121_v31 = vor.u32 %v2507_v28, %v2118_v29  ;;  %v2310_v34 = vld [vmem:[#allocation6 + $0x1a0] sm:$0xf0]  ;;  %v2510_v36 = vld [vmem:[#allocation6 + $0x1c] sm:$0xf0] }
  0x41   :  { %941 = vmatmul.bf16.gmra.mxu0 %v2760_v14  ;;  %1274 = vmatpush.bf16.msrb.mxu3 %v2409_v23  ;;  %v2333_v21 = vor.u32 %v2564_v20, %v2332_v19  ;;  %v2501_v23 = vld [vmem:[#allocation3 + $0x54] sm:$0xf0]  ;;  %v2117_v38 = vor.u32 %v2510_v36, %v2116_v35  ;;  %v2308_v39 = vld [vmem:[#allocation6 + $0x188] sm:$0xf]  ;;  %v2558_v40 = vld [vmem:[#allocation6 + $0x19c] sm:$0xf0] }
  0x42   :  { %990 = vmatmul.bf16.gmra.mxu1 %v2762_v15  ;;  %1128 = vmatpush.bf16.msrb.mxu0 %v2189_v42  ;;  %v2792_v26 = vor.u32 %v2501_v23, %v2084_v22  ;;  %v2092_v42 = vld [vmem:[#allocation3 + $0x60] sm:$0xf]  ;;  %v2503_v43 = vld [vmem:[#allocation3 + $0x64] sm:$0xf0]  ;;  %v2502_v45 = vld [vmem:[#allocation3 + $0x64] sm:$0xf] }
  0x43   :  { %1039 = vmatmul.bf16.gmra.mxu2 %v2760_v14  ;;  %1177 = vmatpush.bf16.msrb.mxu1 %v2381_v46  ;;  %v2094_v46 = vld [vmem:[#allocation3 + $0x68] sm:$0xf0]  ;;  %v2800_v47 = vor.u32 %v2503_v43, %v2092_v42  ;;  %v2550_v50 = vld [vmem:[#allocation6 + $0x164] sm:$0xf]  ;;  %v2294_v51 = vld [vmem:[#allocation6 + $0x178] sm:$0xf0] }
  0x44   :  { %1088 = vmatmul.bf16.gmra.mxu3 %v2762_v15  ;;  %1226 = vmatpush.bf16.msrb.mxu2 %v2193_v37  ;;  %v2313_v37 = vor.u32 %v2555_v30, %v2310_v34  ;;  %v2802_v48 = vor.u32 %v2502_v45, %v2094_v46  ;;  %v2297_v54 = vor.u32 %v2550_v50, %v2294_v51  ;;  %v2598_v55 = vld [vmem:[#allocation6 + $0x2e4] sm:$0xf]  ;;  %v2486_v56 = vld [vmem:[#allocation6 + $0x2f8] sm:$0xf0]  ;;  %v2100_v58 = vld [vmem:[#allocation3 + $0x70] sm:$0xf] }
  0x45   :  { %1275 = vmatpush.bf16.msrb.mxu3 %v2385_v41  ;;  %v2309_v41 = vor.u32 %v2558_v40, %v2308_v39  ;;  %v2505_v59 = vld [vmem:[#allocation3 + $0x74] sm:$0xf0]  ;;  %v2504_v60 = vld [vmem:[#allocation3 + $0x74] sm:$0xf]  ;;  %v2292_v63 = vld [vmem:[#allocation6 + $0x160] sm:$0xf] }
  0x46   :  { %1129 = vmatpush.bf16.msrb.mxu0 %v2165_v62  ;;  %v2808_v62 = vor.u32 %v2505_v59, %v2100_v58  ;;  %v2553_v0 = vld [vmem:[#allocation6 + $0x174] sm:$0xf0]  ;;  %v2544_v8 = vld [vmem:[#allocation6 + $0x134] sm:$0xf]  ;;  %v2270_v9 = vld [vmem:[#allocation6 + $0x148] sm:$0xf0] }
  0x47   :  { %1178 = vmatpush.bf16.msrb.mxu1 %v2357_v1  ;;  %v2484_v1 = vld [vmem:[#allocation6 + $0x2e0] sm:$0xf]  ;;  %v2293_v3 = vor.u32 %v2553_v0, %v2292_v63  ;;  %v2601_v4 = vld [vmem:[#allocation6 + $0x2f4] sm:$0xf0]  ;;  %v2592_v10 = vld [vmem:[#allocation6 + $0x2b4] sm:$0xf] }
  0x48   :  { %1227 = vmatpush.bf16.msrb.mxu2 %v2169_v57  ;;  %v2489_v57 = vor.u32 %v2598_v55, %v2486_v56  ;;  %v2485_v5 = vor.u32 %v2601_v4, %v2484_v1  ;;  %v2462_v12 = vld [vmem:[#allocation6 + $0x2c8] sm:$0xf0]  ;;  %v2816_v16 = vld [vmem:[#allocation8] sm:$0x3f]  ;;  %v2547_v19 = vld [vmem:[#allocation6 + $0x144] sm:$0xf0] }
  0x49   :  { %1276 = vmatpush.bf16.msrb.mxu3 %v2361_v61  ;;  %v2102_v61 = vld [vmem:[#allocation3 + $0x78] sm:$0xf0]  ;;  %v2465_v13 = vor.u32 %v2592_v10, %v2462_v12  ;;  %v2460_v20 = vld [vmem:[#allocation6 + $0x2b0] sm:$0xf]  ;;  %v2595_v23 = vld [vmem:[#allocation6 + $0x2c4] sm:$0xf0] }
  0x4a   :  { %1130 = vmatpush.bf16.msrb.mxu0 %v2141_v18  ;;  %v2810_v2 = vor.u32 %v2504_v60, %v2102_v61  ;;  %v2268_v18 = vld [vmem:[#allocation6 + $0x130] sm:$0xf]  ;;  %v2461_v28 = vor.u32 %v2595_v23, %v2460_v20  ;;  %v2538_v36 = vld [vmem:[#allocation6 + $0x104] sm:$0xf]  ;;  %v2438_v42 = vld [vmem:[#allocation6 + $0x298] sm:$0xf0] }
  0x4b   :  { %1179 = vmatpush.bf16.msrb.mxu1 %v2333_v21  ;;  %v2269_v22 = vor.u32 %v2547_v19, %v2268_v18  ;;  %v2541_v58 = vld [vmem:[#allocation6 + $0x114] sm:$0xf0]  ;;  %v2436_v63 = vld [vmem:[#allocation6 + $0x280] sm:$0xf]  ;;  %v2532_v12 = vld [vmem:[#allocation6 + $0xd4] sm:$0xf] }
  0x4c   :  { %1228 = vmatpush.bf16.msrb.mxu2 %v2145_v11  ;;  %v2273_v11 = vor.u32 %v2544_v8, %v2270_v9  ;;  %v2589_v0 = vld [vmem:[#allocation6 + $0x294] sm:$0xf0]  ;;  %s2719_s2 = smov [#allocation9]   ;;  %s2028_s5 = sshll.u32 %s3007_s3, 4  ;;  %s2029_s5 = int_to_ptr.hbm [resolvable:$true] %s2028_s5 }
  0x4d   :  { %1277 = vmatpush.bf16.msrb.mxu3 %v2337_v17  ;;  %v2819_v17 = vunpack.c.l.bf16 %v2816_v16  ;;  %v2437_v4 = vor.u32 %v2589_v0, %v2436_v63  ;;  %v2574_v0 = vld [vmem:[#allocation6 + $0x224] sm:$0xf]  ;;  %s2026_s29 = sshll.u32 %s2719_s2, 4  ;;  %s2027_s29 = int_to_ptr.vmem [resolvable:$true] %s2026_s29 }
  0x4e   :  { %1131 = vmatpush.bf16.msrb.mxu0 %v2117_v38  ;;  %v2586_v38 = vld [vmem:[#allocation6 + $0x284] sm:$0xf] }
  0x4f   :  { %1180 = vmatpush.bf16.msrb.mxu1 %v2309_v41  ;;  %v1812_v25 = vperm.slane %v2819_v17, 0  ;;  %v1813_v29 = vperm.slane %v2819_v17, 2  ;;  %v2441_v50 = vor.u32 %v2586_v38, %v2438_v42  ;;  %v2535_v38 = vld [vmem:[#allocation6 + $0xe4] sm:$0xf0]  ;;  %v2412_v42 = vld [vmem:[#allocation6 + $0x250] sm:$0xf] }
  0x50   :  { %1229 = vmatpush.bf16.msrb.mxu2 %v2121_v31 }
  0x51   :  { %946 = vmatmul.bf16.gmra.mxu0 %v2768_v32  ;;  %1278 = vmatpush.bf16.msrb.mxu3 %v2313_v37  ;;  %v2826_v31 = vperm.slane %v1812_v25, 0  ;;  %v2829_v34 = vperm.slane %v1813_v29, 0  ;;  %v2246_v37 = vld [vmem:[#allocation6 + $0x118] sm:$0xf0] }
  0x52   :  { %995 = vmatmul.bf16.gmra.mxu1 %v2770_v33  ;;  %1320 = vmatpush.bf16.msra.mxu0 %v2293_v3  ;;  %v2249_v41 = vor.u32 %v2538_v36, %v2246_v37  ;;  %v2220_v37 = vld [vmem:[#allocation6 + $0xd0] sm:$0xf] }
  0x53   :  { %1044 = vmatmul.bf16.gmra.mxu2 %v2768_v32  ;;  %1369 = vmatpush.bf16.msra.mxu1 %v2485_v5 }
  0x54   :  { %1093 = vmatmul.bf16.gmra.mxu3 %v2770_v33  ;;  %1418 = vmatpush.bf16.msra.mxu2 %v2297_v54 }
  0x55   :  { %1467 = vmatpush.bf16.msra.mxu3 %v2489_v57  ;;  %v2244_v57 = vld [vmem:[#allocation6 + $0x100] sm:$0xf] }
  0x56   :  { %1321 = vmatpush.bf16.msra.mxu0 %v2269_v22  ;;  %v2245_v61 = vor.u32 %v2541_v58, %v2244_v57  ;;  %v2414_v22 = vld [vmem:[#allocation6 + $0x268] sm:$0xf0]  ;;  %v2526_v58 = vld [vmem:[#allocation6 + $0xa4] sm:$0xf] }
  0x57   :  { %1370 = vmatpush.bf16.msra.mxu1 %v2461_v28 }
  0x58   :  { %1419 = vmatpush.bf16.msra.mxu2 %v2273_v11 }
  0x59   :  { %1468 = vmatpush.bf16.msra.mxu3 %v2465_v13  ;;  %v2222_v13 = vld [vmem:[#allocation6 + $0xe8] sm:$0xf0] }
  0x5a   :  { %1322 = vmatpush.bf16.msra.mxu0 %v2245_v61  ;;  %v2225_v20 = vor.u32 %v2532_v12, %v2222_v13  ;;  %v2196_v13 = vld [vmem:[#allocation6 + $0xa0] sm:$0xf] }
  0x5b   :  { %1371 = vmatpush.bf16.msra.mxu1 %v2437_v4 }
  0x5c   :  { %1420 = vmatpush.bf16.msra.mxu2 %v2249_v41  ;;  %v2221_v41 = vor.u32 %v2535_v38, %v2220_v37  ;;  %v2520_v38 = vld [vmem:[#allocation6 + $0x74] sm:$0xf] }
  0x5d   :  { %1469 = vmatpush.bf16.msra.mxu3 %v2441_v50 }
  0x5e   :  { %1323 = vmatpush.bf16.msra.mxu0 %v2221_v41 }
  0x60   :  { %1421 = vmatpush.bf16.msra.mxu2 %v2225_v20 }
  0x61   :  { %951 = vmatmul.bf16.gmra.mxu0 %v2776_v52 }
  0x62   :  { %1000 = vmatmul.bf16.gmra.mxu1 %v2778_v53 }
  0x63   :  { %1049 = vmatmul.bf16.gmra.mxu2 %v2776_v52 }
  0x64   :  { %1098 = vmatmul.bf16.gmra.mxu3 %v2778_v53 }
  0x71   :  { %956 = vmatmul.bf16.gmra.mxu0 %v2784_v6 }
  0x72   :  { %1005 = vmatmul.bf16.gmra.mxu1 %v2786_v7 }
  0x73   :  { %1054 = vmatmul.bf16.gmra.mxu2 %v2784_v6 }
  0x74   :  { %1103 = vmatmul.bf16.gmra.mxu3 %v2786_v7 }
  0x81   :  { %961 = vmatmul.bf16.gmra.mxu0 %v2792_v26 }
  0x82   :  { %1010 = vmatmul.bf16.gmra.mxu1 %v2794_v27 }
  0x83   :  { %1059 = vmatmul.bf16.gmra.mxu2 %v2792_v26 }
  0x84   :  { %1108 = vmatmul.bf16.gmra.mxu3 %v2794_v27 }
  0x91   :  { %966 = vmatmul.bf16.gmra.mxu0 %v2800_v47 }
  0x92   :  { %1015 = vmatmul.bf16.gmra.mxu1 %v2802_v48 }
  0x93   :  { %1064 = vmatmul.bf16.gmra.mxu2 %v2800_v47 }
  0x94   :  { %1113 = vmatmul.bf16.gmra.mxu3 %v2802_v48 }
  0xa1   :  { %971 = vmatmul.bf16.gmra.mxu0 %v2808_v62 }
  0xa2   :  { %1020 = vmatmul.bf16.gmra.mxu1 %v2810_v2 }
  0xa3   :  { %1069 = vmatmul.bf16.gmra.mxu2 %v2808_v62 }
  0xa4   :  { %1118 = vmatmul.bf16.gmra.mxu3 %v2810_v2 }
  0xae   :  { %v937_v21 = vpop.f32.mrf.mxu0 }
  0xaf   :  { %v986_v24 = vpop.f32.mrf.mxu1 }
  0xb0   :  { %v987_v30 = vadd.f32 %v986_v24, %v937_v21  ;;  %v2580_v21 = vld [vmem:[#allocation6 + $0x254] sm:$0xf] }
  0xb1   :  { %1132 = vmatmul.bf16.vlgmr.msrb.gmra.mxu0 %v2752_v44  ;;  %v2417_v28 = vor.u32 %v2580_v21, %v2414_v22  ;;  %v2388_v22 = vld [vmem:[#allocation6 + $0x220] sm:$0xf] }
  0xb2   :  { %1181 = vmatmul.bf16.vlgmr.msrb.gmra.mxu1 %v2754_v49  ;;  %v1830_v43 = vadd.f32 %v2826_v31, %v987_v30 }
  0xb3   :  { %1230 = vmatmul.bf16.vlgmr.msrb.gmra.mxu2 %v2752_v44  ;;  %1470 = vmatpush.bf16.msra.mxu3 %v2417_v28 }
  0xb4   :  { %1279 = vmatmul.bf16.vlgmr.msrb.gmra.mxu3 %v2754_v49 }
  0xb6   :  { %v1035_v35 = vpop.f32.mrf.mxu2  ;;  %v939_v40 = vpop.f32.mrf.mxu0 }
  0xb7   :  { %v1084_v39 = vpop.f32.mrf.mxu3  ;;  %v988_v46 = vpop.f32.mrf.mxu1 }
  0xb8   :  { %v1085_v45 = vadd.f32 %v1084_v39, %v1035_v35  ;;  %v989_v55 = vadd.f32 %v988_v46, %v939_v40 }
  0xba   :  { %v1831_v51 = vadd.f32 %v2829_v34, %v1085_v45  ;;  %v1836_v5 = vadd.f32 %v2826_v31, %v989_v55 }
  0xbc   :  { %v1926_v54 = vpack.c.bf16 %v1831_v51, %v1830_v43  ;;  %v2583_v43 = vld [vmem:[#allocation6 + $0x264] sm:$0xf0] }
  0xbd   :  { %v2413_v50 = vor.u32 %v2583_v43, %v2412_v42  ;;  %v2568_v43 = vld [vmem:[#allocation6 + $0x1f4] sm:$0xf] }
  0xbe   :  { %1974 = vst [vmem:[#allocation9] sm:$0xff] %v1926_v54  ;;  %v1037_v56 = vpop.f32.mrf.mxu2  ;;  %v942_v60 = vpop.f32.mrf.mxu0 }
  0xbf   :  { %v1086_v59 = vpop.f32.mrf.mxu3  ;;  %v991_v3 = vpop.f32.mrf.mxu1  ;;  %1372 = vmatpush.bf16.msra.mxu1 %v2413_v50 }
  0xc0   :  { %v1087_v1 = vadd.f32 %v1086_v59, %v1037_v56  ;;  %v992_v10 = vadd.f32 %v991_v3, %v942_v60  ;;  %v2198_v59 = vld [vmem:[#allocation6 + $0xb8] sm:$0xf0] }
  0xc1   :  { %1137 = vmatmul.bf16.gmra.mxu0 %v2760_v14  ;;  %v2201_v63 = vor.u32 %v2526_v58, %v2198_v59  ;;  %v2172_v59 = vld [vmem:[#allocation6 + $0x70] sm:$0xf] }
  0xc2   :  { %v1837_v8 = vadd.f32 %v2829_v34, %v1087_v1  ;;  %1186 = vmatmul.bf16.gmra.mxu1 %v2762_v15  ;;  %v1842_v23 = vadd.f32 %v2826_v31, %v992_v10  ;;  %v2390_v1 = vld [vmem:[#allocation6 + $0x238] sm:$0xf0] }
  0xc3   :  { %1235 = vmatmul.bf16.gmra.mxu2 %v2760_v14 }
  0xc4   :  { %v1929_v9 = vpack.c.bf16 %v1837_v8, %v1836_v5  ;;  %1284 = vmatmul.bf16.gmra.mxu3 %v2762_v15  ;;  %v2393_v8 = vor.u32 %v2574_v0, %v2390_v1  ;;  %1422 = vmatpush.bf16.msra.mxu2 %v2201_v63  ;;  %v2364_v1 = vld [vmem:[#allocation6 + $0x1f0] sm:$0xf] }
  0xc6   :  { %1977 = vst [vmem:[#allocation9 + $0x18] sm:$0xff] %v1929_v9  ;;  %v1040_v11 = vpop.f32.mrf.mxu2  ;;  %v944_v19 = vpop.f32.mrf.mxu0  ;;  %1471 = vmatpush.bf16.msra.mxu3 %v2393_v8 }
  0xc7   :  { %v1089_v18 = vpop.f32.mrf.mxu3  ;;  %v993_v25 = vpop.f32.mrf.mxu1 }
  0xc8   :  { %v1090_v24 = vadd.f32 %v1089_v18, %v1040_v11  ;;  %v994_v35 = vadd.f32 %v993_v25, %v944_v19  ;;  %v2529_v18 = vld [vmem:[#allocation6 + $0xb4] sm:$0xf0] }
  0xc9   :  { %v2197_v21 = vor.u32 %v2529_v18, %v2196_v13  ;;  %v2514_v18 = vld [vmem:[#allocation6 + $0x44] sm:$0xf] }
  0xca   :  { %v1843_v29 = vadd.f32 %v2829_v34, %v1090_v24  ;;  %v1848_v51 = vadd.f32 %v2826_v31, %v994_v35 }
  0xcb   :  { %1324 = vmatpush.bf16.msra.mxu0 %v2197_v21 }
  0xcc   :  { %v1932_v30 = vpack.c.bf16 %v1843_v29, %v1842_v23  ;;  %v2577_v23 = vld [vmem:[#allocation6 + $0x234] sm:$0xf0] }
  0xcd   :  { %v2389_v28 = vor.u32 %v2577_v23, %v2388_v22  ;;  %v2562_v23 = vld [vmem:[#allocation6 + $0x1c4] sm:$0xf] }
  0xce   :  { %1980 = vst [vmem:[#allocation9 + $0x30] sm:$0xff] %v1932_v30  ;;  %v1042_v36 = vpop.f32.mrf.mxu2  ;;  %v947_v40 = vpop.f32.mrf.mxu0 }
  0xcf   :  { %v1091_v39 = vpop.f32.mrf.mxu3  ;;  %v996_v46 = vpop.f32.mrf.mxu1  ;;  %1373 = vmatpush.bf16.msra.mxu1 %v2389_v28 }
  0xd0   :  { %v1092_v45 = vadd.f32 %v1091_v39, %v1042_v36  ;;  %v997_v56 = vadd.f32 %v996_v46, %v947_v40  ;;  %v2174_v39 = vld [vmem:[#allocation6 + $0x88] sm:$0xf0] }
  0xd1   :  { %1142 = vmatmul.bf16.gmra.mxu0 %v2768_v32  ;;  %v2177_v42 = vor.u32 %v2520_v38, %v2174_v39  ;;  %v2148_v39 = vld [vmem:[#allocation6 + $0x40] sm:$0xf] }
  0xd2   :  { %v1849_v54 = vadd.f32 %v2829_v34, %v1092_v45  ;;  %1191 = vmatmul.bf16.gmra.mxu1 %v2770_v33  ;;  %v1854_v3 = vadd.f32 %v2826_v31, %v997_v56  ;;  %v2366_v45 = vld [vmem:[#allocation6 + $0x208] sm:$0xf0] }
  0xd3   :  { %1240 = vmatmul.bf16.gmra.mxu2 %v2768_v32 }
  0xd4   :  { %v1935_v55 = vpack.c.bf16 %v1849_v54, %v1848_v51  ;;  %1289 = vmatmul.bf16.gmra.mxu3 %v2770_v33  ;;  %v2369_v54 = vor.u32 %v2568_v43, %v2366_v45  ;;  %1423 = vmatpush.bf16.msra.mxu2 %v2177_v42  ;;  %v2340_v45 = vld [vmem:[#allocation6 + $0x1c0] sm:$0xf] }
  0xd6   :  { %1983 = vst [vmem:[#allocation9 + $0x48] sm:$0xff] %v1935_v55  ;;  %v1045_v57 = vpop.f32.mrf.mxu2  ;;  %v949_v61 = vpop.f32.mrf.mxu0  ;;  %1472 = vmatpush.bf16.msra.mxu3 %v2369_v54 }
  0xd7   :  { %v1094_v60 = vpop.f32.mrf.mxu3  ;;  %v998_v5 = vpop.f32.mrf.mxu1 }
  0xd8   :  { %v1095_v4 = vadd.f32 %v1094_v60, %v1045_v57  ;;  %v999_v11 = vadd.f32 %v998_v5, %v949_v61  ;;  %v2523_v60 = vld [vmem:[#allocation6 + $0x84] sm:$0xf0] }
  0xd9   :  { %v2173_v0 = vor.u32 %v2523_v60, %v2172_v59  ;;  %v2508_v60 = vld [vmem:[#allocation6 + $0x14] sm:$0xf] }
  0xda   :  { %v1855_v9 = vadd.f32 %v2829_v34, %v1095_v4  ;;  %v1860_v29 = vadd.f32 %v2826_v31, %v999_v11 }
  0xdb   :  { %1325 = vmatpush.bf16.msra.mxu0 %v2173_v0 }
  0xdc   :  { %v1938_v10 = vpack.c.bf16 %v1855_v9, %v1854_v3  ;;  %v2571_v3 = vld [vmem:[#allocation6 + $0x204] sm:$0xf0] }
  0xdd   :  { %v2365_v8 = vor.u32 %v2571_v3, %v2364_v1  ;;  %v2556_v3 = vld [vmem:[#allocation6 + $0x194] sm:$0xf] }
  0xde   :  { %1986 = vst [vmem:[#allocation9 + $0x60] sm:$0xff] %v1938_v10  ;;  %v1047_v12 = vpop.f32.mrf.mxu2  ;;  %v952_v20 = vpop.f32.mrf.mxu0 }
  0xdf   :  { %v1096_v19 = vpop.f32.mrf.mxu3  ;;  %v1001_v25 = vpop.f32.mrf.mxu1  ;;  %1374 = vmatpush.bf16.msra.mxu1 %v2365_v8 }
  0xe0   :  { %v1097_v24 = vadd.f32 %v1096_v19, %v1047_v12  ;;  %v1002_v36 = vadd.f32 %v1001_v25, %v952_v20  ;;  %v2150_v19 = vld [vmem:[#allocation6 + $0x58] sm:$0xf0] }
  0xe1   :  { %1147 = vmatmul.bf16.gmra.mxu0 %v2776_v52  ;;  %v2153_v22 = vor.u32 %v2514_v18, %v2150_v19  ;;  %v2124_v19 = vld [vmem:[#allocation6 + $0x10] sm:$0xf] }
  0xe2   :  { %v1861_v30 = vadd.f32 %v2829_v34, %v1097_v24  ;;  %1196 = vmatmul.bf16.gmra.mxu1 %v2778_v53  ;;  %v1866_v46 = vadd.f32 %v2826_v31, %v1002_v36  ;;  %v2342_v24 = vld [vmem:[#allocation6 + $0x1d8] sm:$0xf0] }
  0xe3   :  { %1245 = vmatmul.bf16.gmra.mxu2 %v2776_v52 }
  0xe4   :  { %v1941_v35 = vpack.c.bf16 %v1861_v30, %v1860_v29  ;;  %1294 = vmatmul.bf16.gmra.mxu3 %v2778_v53  ;;  %v2345_v30 = vor.u32 %v2562_v23, %v2342_v24  ;;  %1424 = vmatpush.bf16.msra.mxu2 %v2153_v22  ;;  %v2316_v24 = vld [vmem:[#allocation6 + $0x190] sm:$0xf] }
  0xe6   :  { %1989 = vst [vmem:[#allocation9 + $0x78] sm:$0xff] %v1941_v35  ;;  %v1050_v37 = vpop.f32.mrf.mxu2  ;;  %v954_v41 = vpop.f32.mrf.mxu0  ;;  %1473 = vmatpush.bf16.msra.mxu3 %v2345_v30 }
  0xe7   :  { %v1099_v40 = vpop.f32.mrf.mxu3  ;;  %v1003_v51 = vpop.f32.mrf.mxu1 }
  0xe8   :  { %v1100_v50 = vadd.f32 %v1099_v40, %v1050_v37  ;;  %v1004_v57 = vadd.f32 %v1003_v51, %v954_v41  ;;  %v2517_v40 = vld [vmem:[#allocation6 + $0x54] sm:$0xf0] }
  0xe9   :  { %v2149_v43 = vor.u32 %v2517_v40, %v2148_v39 }
  0xea   :  { %v1867_v55 = vadd.f32 %v2829_v34, %v1100_v50  ;;  %v1872_v9 = vadd.f32 %v2826_v31, %v1004_v57 }
  0xeb   :  { %1326 = vmatpush.bf16.msra.mxu0 %v2149_v43 }
  0xec   :  { %v1944_v56 = vpack.c.bf16 %v1867_v55, %v1866_v46  ;;  %v2565_v46 = vld [vmem:[#allocation6 + $0x1d4] sm:$0xf0] }
  0xed   :  { %v2341_v54 = vor.u32 %v2565_v46, %v2340_v45 }
  0xee   :  { %1992 = vst [vmem:[#allocation9 + $0x90] sm:$0xff] %v1944_v56  ;;  %v1052_v58 = vpop.f32.mrf.mxu2  ;;  %v957_v63 = vpop.f32.mrf.mxu0 }
  0xef   :  { %v1101_v61 = vpop.f32.mrf.mxu3  ;;  %v1006_v5 = vpop.f32.mrf.mxu1  ;;  %1375 = vmatpush.bf16.msra.mxu1 %v2341_v54 }
  0xf0   :  { %v1102_v4 = vadd.f32 %v1101_v61, %v1052_v58  ;;  %v1007_v12 = vadd.f32 %v1006_v5, %v957_v63  ;;  %v2126_v61 = vld [vmem:[#allocation6 + $0x28] sm:$0xf0] }
  0xf1   :  { %1152 = vmatmul.bf16.gmra.mxu0 %v2784_v6  ;;  %v2129_v1 = vor.u32 %v2508_v60, %v2126_v61 }
  0xf2   :  { %v1873_v10 = vadd.f32 %v2829_v34, %v1102_v4  ;;  %1201 = vmatmul.bf16.gmra.mxu1 %v2786_v7  ;;  %v1878_v25 = vadd.f32 %v2826_v31, %v1007_v12  ;;  %v2318_v4 = vld [vmem:[#allocation6 + $0x1a8] sm:$0xf0] }
  0xf3   :  { %1250 = vmatmul.bf16.gmra.mxu2 %v2784_v6 }
  0xf4   :  { %v1947_v11 = vpack.c.bf16 %v1873_v10, %v1872_v9  ;;  %1299 = vmatmul.bf16.gmra.mxu3 %v2786_v7  ;;  %v2321_v10 = vor.u32 %v2556_v3, %v2318_v4  ;;  %1425 = vmatpush.bf16.msra.mxu2 %v2129_v1 }
  0xf6   :  { %1995 = vst [vmem:[#allocation9 + $0xa8] sm:$0xff] %v1947_v11  ;;  %v1055_v13 = vpop.f32.mrf.mxu2  ;;  %v959_v21 = vpop.f32.mrf.mxu0  ;;  %1474 = vmatpush.bf16.msra.mxu3 %v2321_v10 }
  0xf7   :  { %v1104_v20 = vpop.f32.mrf.mxu3  ;;  %v1008_v29 = vpop.f32.mrf.mxu1 }
  0xf8   :  { %v1105_v28 = vadd.f32 %v1104_v20, %v1055_v13  ;;  %v1009_v37 = vadd.f32 %v1008_v29, %v959_v21  ;;  %v2511_v20 = vld [vmem:[#allocation6 + $0x24] sm:$0xf0] }
  0xf9   :  { %v2125_v23 = vor.u32 %v2511_v20, %v2124_v19 }
  0xfa   :  { %v1879_v35 = vadd.f32 %v2829_v34, %v1105_v28  ;;  %v1884_v55 = vadd.f32 %v2826_v31, %v1009_v37 }
  0xfb   :  { %1327 = vmatpush.bf16.msra.mxu0 %v2125_v23 }
  0xfc   :  { %v1950_v36 = vpack.c.bf16 %v1879_v35, %v1878_v25  ;;  %v2559_v25 = vld [vmem:[#allocation6 + $0x1a4] sm:$0xf0] }
  0xfd   :  { %v2317_v30 = vor.u32 %v2559_v25, %v2316_v24  ;;  %v1815_v24 = vperm.slane %v2819_v17, 6 }
  0xfe   :  { %1998 = vst [vmem:[#allocation9 + $0xc0] sm:$0xff] %v1950_v36  ;;  %v1057_v38 = vpop.f32.mrf.mxu2  ;;  %v962_v42 = vpop.f32.mrf.mxu0 }
  0xff   :  { %v1106_v41 = vpop.f32.mrf.mxu3  ;;  %v1011_v51 = vpop.f32.mrf.mxu1  ;;  %1376 = vmatpush.bf16.msra.mxu1 %v2317_v30 }
 0x100   :  { %v1107_v50 = vadd.f32 %v1106_v41, %v1057_v38  ;;  %v1012_v58 = vadd.f32 %v1011_v51, %v962_v42 }
 0x101   :  { %1157 = vmatmul.bf16.gmra.mxu0 %v2792_v26 }
 0x102   :  { %v1885_v56 = vadd.f32 %v2829_v34, %v1107_v50  ;;  %1206 = vmatmul.bf16.gmra.mxu1 %v2794_v27  ;;  %v1890_v5 = vadd.f32 %v2826_v31, %v1012_v58 }
 0x103   :  { %1255 = vmatmul.bf16.gmra.mxu2 %v2792_v26 }
 0x104   :  { %v1953_v57 = vpack.c.bf16 %v1885_v56, %v1884_v55  ;;  %1304 = vmatmul.bf16.gmra.mxu3 %v2794_v27 }
 0x106   :  { %2001 = vst [vmem:[#allocation9 + $0xd8] sm:$0xff] %v1953_v57  ;;  %v1060_v59 = vpop.f32.mrf.mxu2  ;;  %v964_v0 = vpop.f32.mrf.mxu0 }
 0x107   :  { %v1109_v63 = vpop.f32.mrf.mxu3  ;;  %v1013_v9 = vpop.f32.mrf.mxu1 }
 0x108   :  { %v1110_v8 = vadd.f32 %v1109_v63, %v1060_v59  ;;  %v1014_v13 = vadd.f32 %v1013_v9, %v964_v0 }
 0x10a   :  { %v1891_v11 = vadd.f32 %v2829_v34, %v1110_v8  ;;  %v1896_v35 = vadd.f32 %v2826_v31, %v1014_v13 }
 0x10c   :  { %v1956_v12 = vpack.c.bf16 %v1891_v11, %v1890_v5 }
 0x10e   :  { %2004 = vst [vmem:[#allocation9 + $0xf0] sm:$0xff] %v1956_v12  ;;  %v1062_v18 = vpop.f32.mrf.mxu2  ;;  %v967_v22 = vpop.f32.mrf.mxu0 }
 0x10f   :  { %v1111_v21 = vpop.f32.mrf.mxu3  ;;  %v1016_v29 = vpop.f32.mrf.mxu1 }
 0x110   :  { %v1112_v28 = vadd.f32 %v1111_v21, %v1062_v18  ;;  %v1017_v38 = vadd.f32 %v1016_v29, %v967_v22  ;;  %v1814_v21 = vperm.slane %v2819_v17, 4 }
 0x111   :  { %1162 = vmatmul.bf16.gmra.mxu0 %v2800_v47 }
 0x112   :  { %v1897_v36 = vadd.f32 %v2829_v34, %v1112_v28  ;;  %1211 = vmatmul.bf16.gmra.mxu1 %v2802_v48  ;;  %v1902_v42 = vadd.f32 %v2826_v31, %v1017_v38  ;;  %v2896_v29 = vperm.slane %v1814_v21, 0 }
 0x113   :  { %1260 = vmatmul.bf16.gmra.mxu2 %v2800_v47 }
 0x114   :  { %v1959_v37 = vpack.c.bf16 %v1897_v36, %v1896_v35  ;;  %1309 = vmatmul.bf16.gmra.mxu3 %v2802_v48  ;;  %v2899_v35 = vperm.slane %v1815_v24, 0 }
 0x116   :  { %2007 = vst [vmem:[#allocation9 + $0x108] sm:$0xff] %v1959_v37  ;;  %v1065_v39 = vpop.f32.mrf.mxu2  ;;  %v969_v41 = vpop.f32.mrf.mxu0 }
 0x117   :  { %v1114_v40 = vpop.f32.mrf.mxu3  ;;  %v1018_v45 = vpop.f32.mrf.mxu1 }
 0x118   :  { %v1115_v43 = vadd.f32 %v1114_v40, %v1065_v39  ;;  %v1019_v51 = vadd.f32 %v1018_v45, %v969_v41 }
 0x11a   :  { %v1903_v46 = vadd.f32 %v2829_v34, %v1115_v43  ;;  %v1908_v59 = vadd.f32 %v2826_v31, %v1019_v51 }
 0x11c   :  { %v1962_v50 = vpack.c.bf16 %v1903_v46, %v1902_v42 }
 0x11e   :  { %2010 = vst [vmem:[#allocation9 + $0x120] sm:$0xff] %v1962_v50  ;;  %v1067_v54 = vpop.f32.mrf.mxu2  ;;  %v972_v56 = vpop.f32.mrf.mxu0 }
 0x11f   :  { %v1116_v55 = vpop.f32.mrf.mxu3  ;;  %v1021_v58 = vpop.f32.mrf.mxu1 }
 0x120   :  { %v1117_v57 = vadd.f32 %v1116_v55, %v1067_v54  ;;  %v1022_v63 = vadd.f32 %v1021_v58, %v972_v56 }
 0x121   :  { %1167 = vmatmul.bf16.gmra.mxu0 %v2808_v62 }
 0x122   :  { %v1909_v60 = vadd.f32 %v2829_v34, %v1117_v57  ;;  %1216 = vmatmul.bf16.gmra.mxu1 %v2810_v2  ;;  %v1914_v4 = vadd.f32 %v2826_v31, %v1022_v63 }
 0x123   :  { %1265 = vmatmul.bf16.gmra.mxu2 %v2808_v62 }
 0x124   :  { %v1965_v61 = vpack.c.bf16 %v1909_v60, %v1908_v59  ;;  %1314 = vmatmul.bf16.gmra.mxu3 %v2810_v2 }
 0x126   :  { %2013 = vst [vmem:[#allocation9 + $0x138] sm:$0xff] %v1965_v61  ;;  %v1070_v0 = vpop.f32.mrf.mxu2  ;;  %v974_v3 = vpop.f32.mrf.mxu0 }
 0x127   :  { %v1119_v1 = vpop.f32.mrf.mxu3  ;;  %v1023_v8 = vpop.f32.mrf.mxu1 }
 0x128   :  { %v1120_v5 = vadd.f32 %v1119_v1, %v1070_v0  ;;  %v1024_v11 = vadd.f32 %v1023_v8, %v974_v3 }
 0x12a   :  { %v1915_v9 = vadd.f32 %v2829_v34, %v1120_v5  ;;  %v1920_v22 = vadd.f32 %v2826_v31, %v1024_v11 }
 0x12c   :  { %v1968_v10 = vpack.c.bf16 %v1915_v9, %v1914_v4 }
 0x12e   :  { %2016 = vst [vmem:[#allocation9 + $0x150] sm:$0xff] %v1968_v10  ;;  %v1072_v12 = vpop.f32.mrf.mxu2  ;;  %v1133_v18 = vpop.f32.mrf.mxu0 }
 0x12f   :  { %v1121_v13 = vpop.f32.mrf.mxu3  ;;  %v1182_v20 = vpop.f32.mrf.mxu1 }
 0x130   :  { %v1122_v19 = vadd.f32 %v1121_v13, %v1072_v12  ;;  %v1183_v28 = vadd.f32 %v1182_v20, %v1133_v18 }
 0x131   :  { %1328 = vmatmul.bf16.vlgmr.msra.gmra.mxu0 %v2752_v44 }
 0x132   :  { %v1921_v23 = vadd.f32 %v2829_v34, %v1122_v19  ;;  %1377 = vmatmul.bf16.vlgmr.msra.gmra.mxu1 %v2754_v49  ;;  %v1832_v36 = vadd.f32 %v2896_v29, %v1183_v28 }
 0x133   :  { %1426 = vmatmul.bf16.vlgmr.msra.gmra.mxu2 %v2752_v44 }
 0x134   :  { %v1971_v25 = vpack.c.bf16 %v1921_v23, %v1920_v22  ;;  %1475 = vmatmul.bf16.vlgmr.msra.gmra.mxu3 %v2754_v49 }
 0x136   :  { %2019 = vst [vmem:[#allocation9 + $0x168] sm:$0xff] %v1971_v25  ;;  %v1231_v30 = vpop.f32.mrf.mxu2  ;;  %v1135_v34 = vpop.f32.mrf.mxu0 }
 0x137   :  { %v1280_v31 = vpop.f32.mrf.mxu3  ;;  %v1184_v17 = vpop.f32.mrf.mxu1 }
 0x138   :  { %v1281_v37 = vadd.f32 %v1280_v31, %v1231_v30  ;;  %v1185_v44 = vadd.f32 %v1184_v17, %v1135_v34 }
 0x13a   :  { %v1833_v38 = vadd.f32 %v2899_v35, %v1281_v37  ;;  %v1838_v45 = vadd.f32 %v2896_v29, %v1185_v44 }
 0x13c   :  { %v1927_v39 = vpack.c.bf16 %v1833_v38, %v1832_v36 }
 0x13e   :  { %1975 = vst [vmem:[#allocation9 + $0x8] sm:$0xff] %v1927_v39  ;;  %v1233_v40 = vpop.f32.mrf.mxu2  ;;  %v1138_v42 = vpop.f32.mrf.mxu0 }
 0x13f   :  { %v1282_v41 = vpop.f32.mrf.mxu3  ;;  %v1187_v49 = vpop.f32.mrf.mxu1 }
 0x140   :  { %v1283_v43 = vadd.f32 %v1282_v41, %v1233_v40  ;;  %v1188_v51 = vadd.f32 %v1187_v49, %v1138_v42 }
 0x141   :  { %1333 = vmatmul.bf16.gmra.mxu0 %v2760_v14 }
 0x142   :  { %v1839_v46 = vadd.f32 %v2899_v35, %v1283_v43  ;;  %1382 = vmatmul.bf16.gmra.mxu1 %v2762_v15  ;;  %v1844_v57 = vadd.f32 %v2896_v29, %v1188_v51 }
 0x143   :  { %1431 = vmatmul.bf16.gmra.mxu2 %v2760_v14 }
 0x144   :  { %v1930_v50 = vpack.c.bf16 %v1839_v46, %v1838_v45  ;;  %1480 = vmatmul.bf16.gmra.mxu3 %v2762_v15 }
 0x146   :  { %1978 = vst [vmem:[#allocation9 + $0x20] sm:$0xff] %v1930_v50  ;;  %v1236_v54 = vpop.f32.mrf.mxu2  ;;  %v1140_v56 = vpop.f32.mrf.mxu0 }
 0x147   :  { %v1285_v55 = vpop.f32.mrf.mxu3  ;;  %v1189_v59 = vpop.f32.mrf.mxu1 }
 0x148   :  { %v1286_v58 = vadd.f32 %v1285_v55, %v1236_v54  ;;  %v1190_v63 = vadd.f32 %v1189_v59, %v1140_v56 }
 0x14a   :  { %v1845_v60 = vadd.f32 %v2899_v35, %v1286_v58  ;;  %v1850_v15 = vadd.f32 %v2896_v29, %v1190_v63 }
 0x14c   :  { %v1933_v61 = vpack.c.bf16 %v1845_v60, %v1844_v57 }
 0x14e   :  { %1981 = vst [vmem:[#allocation9 + $0x38] sm:$0xff] %v1933_v61  ;;  %v1238_v0 = vpop.f32.mrf.mxu2  ;;  %v1143_v14 = vpop.f32.mrf.mxu0 }
 0x14f   :  { %v1287_v1 = vpop.f32.mrf.mxu3  ;;  %v1192_v4 = vpop.f32.mrf.mxu1 }
 0x150   :  { %v1288_v3 = vadd.f32 %v1287_v1, %v1238_v0  ;;  %v1193_v9 = vadd.f32 %v1192_v4, %v1143_v14 }
 0x151   :  { %1338 = vmatmul.bf16.gmra.mxu0 %v2768_v32 }
 0x152   :  { %v1851_v5 = vadd.f32 %v2899_v35, %v1288_v3  ;;  %1387 = vmatmul.bf16.gmra.mxu1 %v2770_v33  ;;  %v1856_v13 = vadd.f32 %v2896_v29, %v1193_v9 }
 0x153   :  { %1436 = vmatmul.bf16.gmra.mxu2 %v2768_v32 }
 0x154   :  { %v1936_v8 = vpack.c.bf16 %v1851_v5, %v1850_v15  ;;  %1485 = vmatmul.bf16.gmra.mxu3 %v2770_v33 }
 0x156   :  { %1984 = vst [vmem:[#allocation9 + $0x50] sm:$0xff] %v1936_v8  ;;  %v1241_v10 = vpop.f32.mrf.mxu2  ;;  %v1145_v12 = vpop.f32.mrf.mxu0 }
 0x157   :  { %v1290_v11 = vpop.f32.mrf.mxu3  ;;  %v1194_v19 = vpop.f32.mrf.mxu1 }
 0x158   :  { %v1291_v18 = vadd.f32 %v1290_v11, %v1241_v10  ;;  %v1195_v22 = vadd.f32 %v1194_v19, %v1145_v12 }
 0x15a   :  { %v1857_v20 = vadd.f32 %v2899_v35, %v1291_v18  ;;  %v1862_v33 = vadd.f32 %v2896_v29, %v1195_v22 }
 0x15c   :  { %v1939_v21 = vpack.c.bf16 %v1857_v20, %v1856_v13 }
 0x15e   :  { %1987 = vst [vmem:[#allocation9 + $0x68] sm:$0xff] %v1939_v21  ;;  %v1243_v23 = vpop.f32.mrf.mxu2  ;;  %v1148_v32 = vpop.f32.mrf.mxu0 }
 0x15f   :  { %v1292_v24 = vpop.f32.mrf.mxu3  ;;  %v1197_v28 = vpop.f32.mrf.mxu1 }
 0x160   :  { %v1293_v25 = vadd.f32 %v1292_v24, %v1243_v23  ;;  %v1198_v34 = vadd.f32 %v1197_v28, %v1148_v32 }
 0x161   :  { %1343 = vmatmul.bf16.gmra.mxu0 %v2776_v52 }
 0x162   :  { %v1863_v30 = vadd.f32 %v2899_v35, %v1293_v25  ;;  %1392 = vmatmul.bf16.gmra.mxu1 %v2778_v53  ;;  %v1868_v38 = vadd.f32 %v2896_v29, %v1198_v34 }
 0x163   :  { %1441 = vmatmul.bf16.gmra.mxu2 %v2776_v52 }
 0x164   :  { %v1942_v31 = vpack.c.bf16 %v1863_v30, %v1862_v33  ;;  %1490 = vmatmul.bf16.gmra.mxu3 %v2778_v53 }
 0x166   :  { %1990 = vst [vmem:[#allocation9 + $0x80] sm:$0xff] %v1942_v31  ;;  %v1246_v36 = vpop.f32.mrf.mxu2  ;;  %v1150_v17 = vpop.f32.mrf.mxu0 }
 0x167   :  { %v1295_v37 = vpop.f32.mrf.mxu3  ;;  %v1199_v44 = vpop.f32.mrf.mxu1 }
 0x168   :  { %v1296_v39 = vadd.f32 %v1295_v37, %v1246_v36  ;;  %v1200_v42 = vadd.f32 %v1199_v44, %v1150_v17 }
 0x16a   :  { %v1869_v40 = vadd.f32 %v2899_v35, %v1296_v39  ;;  %v1874_v53 = vadd.f32 %v2896_v29, %v1200_v42 }
 0x16c   :  { %v1945_v41 = vpack.c.bf16 %v1869_v40, %v1868_v38 }
 0x16e   :  { %1993 = vst [vmem:[#allocation9 + $0x98] sm:$0xff] %v1945_v41  ;;  %v1248_v43 = vpop.f32.mrf.mxu2  ;;  %v1153_v52 = vpop.f32.mrf.mxu0 }
 0x16f   :  { %v1297_v49 = vpop.f32.mrf.mxu3  ;;  %v1202_v46 = vpop.f32.mrf.mxu1 }
 0x170   :  { %v1298_v45 = vadd.f32 %v1297_v49, %v1248_v43  ;;  %v1203_v54 = vadd.f32 %v1202_v46, %v1153_v52 }
 0x171   :  { %1348 = vmatmul.bf16.gmra.mxu0 %v2784_v6 }
 0x172   :  { %v1875_v50 = vadd.f32 %v2899_v35, %v1298_v45  ;;  %1397 = vmatmul.bf16.gmra.mxu1 %v2786_v7  ;;  %v1880_v58 = vadd.f32 %v2896_v29, %v1203_v54 }
 0x173   :  { %1446 = vmatmul.bf16.gmra.mxu2 %v2784_v6 }
 0x174   :  { %v1948_v51 = vpack.c.bf16 %v1875_v50, %v1874_v53  ;;  %1495 = vmatmul.bf16.gmra.mxu3 %v2786_v7 }
 0x176   :  { %1996 = vst [vmem:[#allocation9 + $0xb0] sm:$0xff] %v1948_v51  ;;  %v1251_v55 = vpop.f32.mrf.mxu2  ;;  %v1155_v57 = vpop.f32.mrf.mxu0 }
 0x177   :  { %v1300_v56 = vpop.f32.mrf.mxu3  ;;  %v1204_v60 = vpop.f32.mrf.mxu1 }
 0x178   :  { %v1301_v59 = vadd.f32 %v1300_v56, %v1251_v55  ;;  %v1205_v0 = vadd.f32 %v1204_v60, %v1155_v57 }
 0x17a   :  { %v1881_v61 = vadd.f32 %v2899_v35, %v1301_v59  ;;  %v1886_v7 = vadd.f32 %v2896_v29, %v1205_v0 }
 0x17c   :  { %v1951_v63 = vpack.c.bf16 %v1881_v61, %v1880_v58  ;;  %v1809_v58 = vunpack.c.h.bf16 %v2816_v16 }
 0x17e   :  { %1999 = vst [vmem:[#allocation9 + $0xc8] sm:$0xff] %v1951_v63  ;;  %v1253_v1 = vpop.f32.mrf.mxu2  ;;  %v1158_v6 = vpop.f32.mrf.mxu0  ;;  %v1816_v0 = vperm.slane %v1809_v58, 0 }
 0x17f   :  { %v1302_v14 = vpop.f32.mrf.mxu3  ;;  %v1207_v4 = vpop.f32.mrf.mxu1 }
 0x180   :  { %v1303_v3 = vadd.f32 %v1302_v14, %v1253_v1  ;;  %v1208_v8 = vadd.f32 %v1207_v4, %v1158_v6  ;;  %v1817_v6 = vperm.slane %v1809_v58, 2 }
 0x181   :  { %1353 = vmatmul.bf16.gmra.mxu0 %v2792_v26 }
 0x182   :  { %v1887_v15 = vadd.f32 %v2899_v35, %v1303_v3  ;;  %1402 = vmatmul.bf16.gmra.mxu1 %v2794_v27  ;;  %v1892_v12 = vadd.f32 %v2896_v29, %v1208_v8  ;;  %v2964_v16 = vperm.slane %v1817_v6, 0 }
 0x183   :  { %1451 = vmatmul.bf16.gmra.mxu2 %v2792_v26 }
 0x184   :  { %v1954_v5 = vpack.c.bf16 %v1887_v15, %v1886_v7  ;;  %1500 = vmatmul.bf16.gmra.mxu3 %v2794_v27  ;;  %v2962_v7 = vperm.slane %v1816_v0, 0 }
 0x186   :  { %2002 = vst [vmem:[#allocation9 + $0xe0] sm:$0xff] %v1954_v5  ;;  %v1256_v9 = vpop.f32.mrf.mxu2  ;;  %v1160_v11 = vpop.f32.mrf.mxu0 }
 0x187   :  { %v1305_v10 = vpop.f32.mrf.mxu3  ;;  %v1209_v18 = vpop.f32.mrf.mxu1 }
 0x188   :  { %v1306_v13 = vadd.f32 %v1305_v10, %v1256_v9  ;;  %v1210_v21 = vadd.f32 %v1209_v18, %v1160_v11 }
 0x18a   :  { %v1893_v19 = vadd.f32 %v2899_v35, %v1306_v13  ;;  %v1898_v27 = vadd.f32 %v2896_v29, %v1210_v21 }
 0x18c   :  { %v1957_v20 = vpack.c.bf16 %v1893_v19, %v1892_v12 }
 0x18e   :  { %2005 = vst [vmem:[#allocation9 + $0xf8] sm:$0xff] %v1957_v20  ;;  %v1258_v22 = vpop.f32.mrf.mxu2  ;;  %v1163_v26 = vpop.f32.mrf.mxu0 }
 0x18f   :  { %v1307_v23 = vpop.f32.mrf.mxu3  ;;  %v1212_v32 = vpop.f32.mrf.mxu1 }
 0x190   :  { %v1308_v24 = vadd.f32 %v1307_v23, %v1258_v22  ;;  %v1213_v33 = vadd.f32 %v1212_v32, %v1163_v26 }
 0x191   :  { %1358 = vmatmul.bf16.gmra.mxu0 %v2800_v47 }
 0x192   :  { %v1899_v25 = vadd.f32 %v2899_v35, %v1308_v24  ;;  %1407 = vmatmul.bf16.gmra.mxu1 %v2802_v48  ;;  %v1904_v36 = vadd.f32 %v2896_v29, %v1213_v33 }
 0x193   :  { %1456 = vmatmul.bf16.gmra.mxu2 %v2800_v47 }
 0x194   :  { %v1960_v28 = vpack.c.bf16 %v1899_v25, %v1898_v27  ;;  %1505 = vmatmul.bf16.gmra.mxu3 %v2802_v48 }
 0x196   :  { %2008 = vst [vmem:[#allocation9 + $0x110] sm:$0xff] %v1960_v28  ;;  %v1261_v30 = vpop.f32.mrf.mxu2  ;;  %v1165_v34 = vpop.f32.mrf.mxu0 }
 0x197   :  { %v1310_v31 = vpop.f32.mrf.mxu3  ;;  %v1214_v17 = vpop.f32.mrf.mxu1 }
 0x198   :  { %v1311_v37 = vadd.f32 %v1310_v31, %v1261_v30  ;;  %v1215_v44 = vadd.f32 %v1214_v17, %v1165_v34 }
 0x19a   :  { %v1905_v38 = vadd.f32 %v2899_v35, %v1311_v37  ;;  %v1910_v48 = vadd.f32 %v2896_v29, %v1215_v44 }
 0x19c   :  { %v1963_v39 = vpack.c.bf16 %v1905_v38, %v1904_v36 }
 0x19e   :  { %2011 = vst [vmem:[#allocation9 + $0x128] sm:$0xff] %v1963_v39  ;;  %v1263_v40 = vpop.f32.mrf.mxu2  ;;  %v1168_v47 = vpop.f32.mrf.mxu0 }
 0x19f   :  { %v1312_v41 = vpop.f32.mrf.mxu3  ;;  %v1217_v43 = vpop.f32.mrf.mxu1 }
 0x1a0   :  { %v1313_v42 = vadd.f32 %v1312_v41, %v1263_v40  ;;  %v1218_v45 = vadd.f32 %v1217_v43, %v1168_v47 }
 0x1a1   :  { %1363 = vmatmul.bf16.gmra.mxu0 %v2808_v62 }
 0x1a2   :  { %v1911_v49 = vadd.f32 %v2899_v35, %v1313_v42  ;;  %1412 = vmatmul.bf16.gmra.mxu1 %v2810_v2  ;;  %v1916_v51 = vadd.f32 %v2896_v29, %v1218_v45 }
 0x1a3   :  { %1461 = vmatmul.bf16.gmra.mxu2 %v2808_v62 }
 0x1a4   :  { %v1966_v52 = vpack.c.bf16 %v1911_v49, %v1910_v48  ;;  %1510 = vmatmul.bf16.gmra.mxu3 %v2810_v2 }
 0x1a6   :  { %2014 = vst [vmem:[#allocation9 + $0x140] sm:$0xff] %v1966_v52  ;;  %v1266_v46 = vpop.f32.mrf.mxu2  ;;  %v1170_v50 = vpop.f32.mrf.mxu0 }
 0x1a7   :  { %v1315_v53 = vpop.f32.mrf.mxu3  ;;  %v1219_v55 = vpop.f32.mrf.mxu1 }
 0x1a8   :  { %v1316_v54 = vadd.f32 %v1315_v53, %v1266_v46  ;;  %v1220_v59 = vadd.f32 %v1219_v55, %v1170_v50 }
 0x1aa   :  { %v1917_v56 = vadd.f32 %v2899_v35, %v1316_v54  ;;  %v1922_v1 = vadd.f32 %v2896_v29, %v1220_v59 }
 0x1ac   :  { %v1969_v57 = vpack.c.bf16 %v1917_v56, %v1916_v51 }
 0x1ae   :  { %2017 = vst [vmem:[#allocation9 + $0x158] sm:$0xff] %v1969_v57  ;;  %v1268_v62 = vpop.f32.mrf.mxu2  ;;  %v1329_v61 = vpop.f32.mrf.mxu0 }
 0x1af   :  { %v1317_v60 = vpop.f32.mrf.mxu3  ;;  %v1378_v2 = vpop.f32.mrf.mxu1 }
 0x1b0   :  { %v1318_v63 = vadd.f32 %v1317_v60, %v1268_v62  ;;  %v1379_v4 = vadd.f32 %v1378_v2, %v1329_v61 }
 0x1b2   :  { %v1923_v14 = vadd.f32 %v2899_v35, %v1318_v63  ;;  %v1834_v9 = vadd.f32 %v2962_v7, %v1379_v4 }
 0x1b4   :  { %v1972_v3 = vpack.c.bf16 %v1923_v14, %v1922_v1 }
 0x1b6   :  { %2020 = vst [vmem:[#allocation9 + $0x170] sm:$0xff] %v1972_v3  ;;  %v1427_v15 = vpop.f32.mrf.mxu2  ;;  %v1331_v8 = vpop.f32.mrf.mxu0 }
 0x1b7   :  { %v1476_v5 = vpop.f32.mrf.mxu3  ;;  %v1380_v11 = vpop.f32.mrf.mxu1 }
 0x1b8   :  { %v1477_v10 = vadd.f32 %v1476_v5, %v1427_v15  ;;  %v1381_v35 = vadd.f32 %v1380_v11, %v1331_v8 }
 0x1ba   :  { %v1835_v12 = vadd.f32 %v2964_v16, %v1477_v10  ;;  %v1840_v22 = vadd.f32 %v2962_v7, %v1381_v35 }
 0x1bc   :  { %v1928_v29 = vpack.c.bf16 %v1835_v12, %v1834_v9 }
 0x1be   :  { %1976 = vst [vmem:[#allocation9 + $0x10] sm:$0xff] %v1928_v29  ;;  %v1429_v13 = vpop.f32.mrf.mxu2  ;;  %v1334_v19 = vpop.f32.mrf.mxu0 }
 0x1bf   :  { %v1478_v18 = vpop.f32.mrf.mxu3  ;;  %v1383_v21 = vpop.f32.mrf.mxu1 }
 0x1c0   :  { %v1479_v20 = vadd.f32 %v1478_v18, %v1429_v13  ;;  %v1384_v24 = vadd.f32 %v1383_v21, %v1334_v19 }
 0x1c2   :  { %v1841_v23 = vadd.f32 %v2964_v16, %v1479_v20  ;;  %v1846_v28 = vadd.f32 %v2962_v7, %v1384_v24 }
 0x1c4   :  { %v1931_v26 = vpack.c.bf16 %v1841_v23, %v1840_v22 }
 0x1c6   :  { %1979 = vst [vmem:[#allocation9 + $0x28] sm:$0xff] %v1931_v26  ;;  %v1432_v32 = vpop.f32.mrf.mxu2  ;;  %v1336_v25 = vpop.f32.mrf.mxu0 }
 0x1c7   :  { %v1481_v27 = vpop.f32.mrf.mxu3  ;;  %v1385_v30 = vpop.f32.mrf.mxu1 }
 0x1c8   :  { %v1482_v33 = vadd.f32 %v1481_v27, %v1432_v32  ;;  %v1386_v36 = vadd.f32 %v1385_v30, %v1336_v25 }
 0x1ca   :  { %v1847_v31 = vadd.f32 %v2964_v16, %v1482_v33  ;;  %v1852_v40 = vadd.f32 %v2962_v7, %v1386_v36 }
 0x1cc   :  { %v1934_v34 = vpack.c.bf16 %v1847_v31, %v1846_v28 }
 0x1ce   :  { %1982 = vst [vmem:[#allocation9 + $0x40] sm:$0xff] %v1934_v34  ;;  %v1434_v37 = vpop.f32.mrf.mxu2  ;;  %v1339_v38 = vpop.f32.mrf.mxu0 }
 0x1cf   :  { %v1483_v17 = vpop.f32.mrf.mxu3  ;;  %v1388_v44 = vpop.f32.mrf.mxu1 }
 0x1d0   :  { %v1484_v39 = vadd.f32 %v1483_v17, %v1434_v37  ;;  %v1389_v42 = vadd.f32 %v1388_v44, %v1339_v38 }
 0x1d2   :  { %v1853_v41 = vadd.f32 %v2964_v16, %v1484_v39  ;;  %v1858_v52 = vadd.f32 %v2962_v7, %v1389_v42 }
 0x1d4   :  { %v1937_v47 = vpack.c.bf16 %v1853_v41, %v1852_v40 }
 0x1d6   :  { %1985 = vst [vmem:[#allocation9 + $0x58] sm:$0xff] %v1937_v47  ;;  %v1437_v43 = vpop.f32.mrf.mxu2  ;;  %v1341_v49 = vpop.f32.mrf.mxu0 }
 0x1d7   :  { %v1486_v48 = vpop.f32.mrf.mxu3  ;;  %v1390_v46 = vpop.f32.mrf.mxu1 }
 0x1d8   :  { %v1487_v45 = vadd.f32 %v1486_v48, %v1437_v43  ;;  %v1391_v51 = vadd.f32 %v1390_v46, %v1341_v49 }
 0x1da   :  { %v1859_v53 = vadd.f32 %v2964_v16, %v1487_v45  ;;  %v1864_v59 = vadd.f32 %v2962_v7, %v1391_v51 }
 0x1dc   :  { %v1940_v50 = vpack.c.bf16 %v1859_v53, %v1858_v52 }
 0x1de   :  { %1988 = vst [vmem:[#allocation9 + $0x70] sm:$0xff] %v1940_v50  ;;  %v1439_v54 = vpop.f32.mrf.mxu2  ;;  %v1344_v56 = vpop.f32.mrf.mxu0 }
 0x1df   :  { %v1488_v55 = vpop.f32.mrf.mxu3  ;;  %v1393_v58 = vpop.f32.mrf.mxu1 }
 0x1e0   :  { %v1489_v57 = vadd.f32 %v1488_v55, %v1439_v54  ;;  %v1394_v61 = vadd.f32 %v1393_v58, %v1344_v56 }
 0x1e2   :  { %v1865_v62 = vadd.f32 %v2964_v16, %v1489_v57  ;;  %v1870_v1 = vadd.f32 %v2962_v7, %v1394_v61 }
 0x1e4   :  { %v1943_v60 = vpack.c.bf16 %v1865_v62, %v1864_v59 }
 0x1e6   :  { %1991 = vst [vmem:[#allocation9 + $0x88] sm:$0xff] %v1943_v60  ;;  %v1442_v63 = vpop.f32.mrf.mxu2  ;;  %v1346_v0 = vpop.f32.mrf.mxu0 }
 0x1e7   :  { %v1491_v2 = vpop.f32.mrf.mxu3  ;;  %v1395_v6 = vpop.f32.mrf.mxu1 }
 0x1e8   :  { %v1492_v14 = vadd.f32 %v1491_v2, %v1442_v63  ;;  %v1396_v15 = vadd.f32 %v1395_v6, %v1346_v0 }
 0x1ea   :  { %v1871_v3 = vadd.f32 %v2964_v16, %v1492_v14  ;;  %v1876_v12 = vadd.f32 %v2962_v7, %v1396_v15 }
 0x1ec   :  { %v1946_v4 = vpack.c.bf16 %v1871_v3, %v1870_v1 }
 0x1ee   :  { %1994 = vst [vmem:[#allocation9 + $0xa0] sm:$0xff] %v1946_v4  ;;  %v1444_v5 = vpop.f32.mrf.mxu2  ;;  %v1349_v9 = vpop.f32.mrf.mxu0 }
 0x1ef   :  { %v1493_v8 = vpop.f32.mrf.mxu3  ;;  %v1398_v11 = vpop.f32.mrf.mxu1 }
 0x1f0   :  { %v1494_v10 = vadd.f32 %v1493_v8, %v1444_v5  ;;  %v1399_v13 = vadd.f32 %v1398_v11, %v1349_v9 }
 0x1f2   :  { %v1877_v29 = vadd.f32 %v2964_v16, %v1494_v10  ;;  %v1882_v21 = vadd.f32 %v2962_v7, %v1399_v13 }
 0x1f4   :  { %v1949_v35 = vpack.c.bf16 %v1877_v29, %v1876_v12 }
 0x1f6   :  { %1997 = vst [vmem:[#allocation9 + $0xb8] sm:$0xff] %v1949_v35  ;;  %v1447_v18 = vpop.f32.mrf.mxu2  ;;  %v1351_v20 = vpop.f32.mrf.mxu0 }
 0x1f7   :  { %v1496_v19 = vpop.f32.mrf.mxu3  ;;  %v1400_v23 = vpop.f32.mrf.mxu1 }
 0x1f8   :  { %v1497_v22 = vadd.f32 %v1496_v19, %v1447_v18  ;;  %v1401_v32 = vadd.f32 %v1400_v23, %v1351_v20 }
 0x1fa   :  { %v1883_v26 = vadd.f32 %v2964_v16, %v1497_v22  ;;  %v1888_v31 = vadd.f32 %v2962_v7, %v1401_v32 }
 0x1fc   :  { %v1952_v24 = vpack.c.bf16 %v1883_v26, %v1882_v21 }
 0x1fe   :  { %2000 = vst [vmem:[#allocation9 + $0xd0] sm:$0xff] %v1952_v24  ;;  %v1449_v27 = vpop.f32.mrf.mxu2  ;;  %v1354_v28 = vpop.f32.mrf.mxu0 }
 0x1ff   :  { %v1498_v25 = vpop.f32.mrf.mxu3  ;;  %v1403_v30 = vpop.f32.mrf.mxu1 }
 0x200   :  { %v1499_v33 = vadd.f32 %v1498_v25, %v1449_v27  ;;  %v1404_v37 = vadd.f32 %v1403_v30, %v1354_v28 }
 0x202   :  { %v1889_v34 = vadd.f32 %v2964_v16, %v1499_v33  ;;  %v1894_v44 = vadd.f32 %v2962_v7, %v1404_v37 }
 0x204   :  { %v1955_v36 = vpack.c.bf16 %v1889_v34, %v1888_v31 }
 0x206   :  { %2003 = vst [vmem:[#allocation9 + $0xe8] sm:$0xff] %v1955_v36  ;;  %v1452_v17 = vpop.f32.mrf.mxu2  ;;  %v1356_v39 = vpop.f32.mrf.mxu0 }
 0x207   :  { %v1501_v38 = vpop.f32.mrf.mxu3  ;;  %v1405_v41 = vpop.f32.mrf.mxu1 }
 0x208   :  { %v1502_v40 = vadd.f32 %v1501_v38, %v1452_v17  ;;  %v1406_v43 = vadd.f32 %v1405_v41, %v1356_v39 }
 0x20a   :  { %v1895_v47 = vadd.f32 %v2964_v16, %v1502_v40  ;;  %v1900_v53 = vadd.f32 %v2962_v7, %v1406_v43 }
 0x20c   :  { %v1958_v42 = vpack.c.bf16 %v1895_v47, %v1894_v44 }
 0x20e   :  { %2006 = vst [vmem:[#allocation9 + $0x100] sm:$0xff] %v1958_v42  ;;  %v1454_v48 = vpop.f32.mrf.mxu2  ;;  %v1359_v52 = vpop.f32.mrf.mxu0 }
 0x20f   :  { %v1503_v49 = vpop.f32.mrf.mxu3  ;;  %v1408_v46 = vpop.f32.mrf.mxu1 }
 0x210   :  { %v1504_v45 = vadd.f32 %v1503_v49, %v1454_v48  ;;  %v1409_v54 = vadd.f32 %v1408_v46, %v1359_v52 }
 0x212   :  { %v1901_v50 = vadd.f32 %v2964_v16, %v1504_v45  ;;  %v1906_v58 = vadd.f32 %v2962_v7, %v1409_v54 }
 0x214   :  { %v1961_v51 = vpack.c.bf16 %v1901_v50, %v1900_v53 }
 0x216   :  { %2009 = vst [vmem:[#allocation9 + $0x118] sm:$0xff] %v1961_v51  ;;  %v1457_v55 = vpop.f32.mrf.mxu2  ;;  %v1361_v57 = vpop.f32.mrf.mxu0 }
 0x217   :  { %v1506_v56 = vpop.f32.mrf.mxu3  ;;  %v1410_v62 = vpop.f32.mrf.mxu1 }
 0x218   :  { %v1507_v59 = vadd.f32 %v1506_v56, %v1457_v55  ;;  %v1411_v63 = vadd.f32 %v1410_v62, %v1361_v57 }
 0x21a   :  { %v1907_v60 = vadd.f32 %v2964_v16, %v1507_v59  ;;  %v1912_v3 = vadd.f32 %v2962_v7, %v1411_v63 }
 0x21c   :  { %v1964_v61 = vpack.c.bf16 %v1907_v60, %v1906_v58 }
 0x21e   :  { %2012 = vst [vmem:[#allocation9 + $0x130] sm:$0xff] %v1964_v61  ;;  %v1459_v2 = vpop.f32.mrf.mxu2  ;;  %v1364_v14 = vpop.f32.mrf.mxu0 }
 0x21f   :  { %v1508_v0 = vpop.f32.mrf.mxu3  ;;  %v1413_v6 = vpop.f32.mrf.mxu1 }
 0x220   :  { %v1509_v1 = vadd.f32 %v1508_v0, %v1459_v2  ;;  %v1414_v5 = vadd.f32 %v1413_v6, %v1364_v14 }
 0x222   :  { %v1913_v4 = vadd.f32 %v2964_v16, %v1509_v1  ;;  %v1918_v10 = vadd.f32 %v2962_v7, %v1414_v5 }
 0x224   :  { %v1967_v15 = vpack.c.bf16 %v1913_v4, %v1912_v3 }
 0x226   :  { %2015 = vst [vmem:[#allocation9 + $0x148] sm:$0xff] %v1967_v15  ;;  %v1462_v8 = vpop.f32.mrf.mxu2  ;;  %v1366_v29 = vpop.f32.mrf.mxu0 }
 0x227   :  { %v1511_v9 = vpop.f32.mrf.mxu3  ;;  %v1415_v35 = vpop.f32.mrf.mxu1 }
 0x228   :  { %v1512_v11 = vadd.f32 %v1511_v9, %v1462_v8  ;;  %v1416_v18 = vadd.f32 %v1415_v35, %v1366_v29 }
 0x22a   :  { %v1919_v12 = vadd.f32 %v2964_v16, %v1512_v11  ;;  %v1924_v22 = vadd.f32 %v2962_v7, %v1416_v18 }
 0x22c   :  { %v1970_v13 = vpack.c.bf16 %v1919_v12, %v1918_v10 }
 0x22e   :  { %2018 = vst [vmem:[#allocation9 + $0x160] sm:$0xff] %v1970_v13  ;;  %v1464_v19 = vpop.f32.mrf.mxu2 }
 0x22f   :  { %v1513_v20 = vpop.f32.mrf.mxu3 }
 0x230   :  { %v1514_v21 = vadd.f32 %v1513_v20, %v1464_v19 }
 0x232   :  { %v1925_v23 = vadd.f32 %v2964_v16, %v1514_v21 }
 0x234   :  { %v1973_v26 = vpack.c.bf16 %v1925_v23, %v1924_v22 }
 0x236   :  { %2021 = vst [vmem:[#allocation9 + $0x178] sm:$0xff] %v1973_v26 }
 0x237   :  { %2034 = dma.vmem_to_hbm [thread:$0]  %s2027_s29, 6144, %s2029_s5, [#allocation5], %s2713_s20, %s2713_s20, %s2714_s21  }
 0x238   :  { %2710 = dma.done.wait [#allocation5], 6144  }
 0x239   :  { %2711 = vsyncadd [#allocation5], 4294961152 }
 0x23a   :  { %2039 = vsyncpa [#allocation4], 1 }
 0x23b   :  { %2040 = vsyncpa [#allocation7], 1 }
 0x23c   :  { %2041 = vsyncpa [#allocation5], 1 }

</bundles_post_ra>
